<compile_context>
chip_gen: v7x
topology: tpu7x:2x2x1
jax: 0.10.0
libtpu: 0.0.40
codegen_flags: <defaults>
</compile_context>

<pallas_src>
import functools

import jax
import jax.numpy as jnp
import numpy as np
from jax.experimental import pallas as pl
from jax.experimental.pallas import tpu as pltpu

_CONV_DTYPE = jnp.bfloat16        # MXU operand dtype (f32 accumulation)
_LN_EPS = 1e-5                    # torch.nn.LayerNorm default
_VMEM_LIMIT = 32 * 1024 * 1024    # explicit scoped-VMEM limit (v5e default is 16 MiB)


# ----------------------------------------------------------------------------
# Kernel 1: duration VarPredictor, batch folded into rows, tiled grid over row
# blocks.  Conv1d(k=3,pad=1) -> LN -> ReLU -> Conv1d -> LN -> ReLU -> Linear(F,1)
# -> ReLU, output packed lane-major as (1, 1, rows_per_block).
# ----------------------------------------------------------------------------
def _duration_predictor_kernel(x_ref, w1_ref, b1_ref, g1_ref, be1_ref,
                               w2_ref, b2_ref, g2_ref, be2_ref,
                               wl_ref, bl_ref, out_ref, *, seq_len):
    x = x_ref[...]                                            # (M, D) f32, M = spb*L
    M = x.shape[0]
    # per-sequence position so conv shifts never leak across sequence boundaries
    pos = jax.lax.broadcasted_iota(jnp.int32, (M, 1), 0) % seq_len

    def conv3(h, w_ref, b_ref):
        # Conv1d(kernel=3, padding=1): three shifted matmuls (non-negative rolls only).
        prev = jnp.where(pos > 0, pltpu.roll(h, shift=1, axis=0), 0.0)
        nxt = jnp.where(pos < seq_len - 1, pltpu.roll(h, shift=M - 1, axis=0), 0.0)
        y = (jnp.dot(prev.astype(_CONV_DTYPE), w_ref[0], preferred_element_type=jnp.float32)
             + jnp.dot(h.astype(_CONV_DTYPE), w_ref[1], preferred_element_type=jnp.float32)
             + jnp.dot(nxt.astype(_CONV_DTYPE), w_ref[2], preferred_element_type=jnp.float32))
        return y + b_ref[...]

    def layer_norm(h, g_ref, be_ref):
        mu = jnp.mean(h, axis=-1, keepdims=True)
        var = jnp.mean(jnp.square(h - mu), axis=-1, keepdims=True)
        return (h - mu) * jax.lax.rsqrt(var + _LN_EPS) * g_ref[...] + be_ref[...]

    h = jnp.maximum(layer_norm(conv3(x, w1_ref, b1_ref), g1_ref, be1_ref), 0.0)
    h = jnp.maximum(layer_norm(conv3(h, w2_ref, b2_ref), g2_ref, be2_ref), 0.0)
    # Linear(F -> 1), lane-major output: (1, F) x (M, F)^T -> (1, M), bf16 operands.
    out = jax.lax.dot_general(wl_ref[...], h.astype(_CONV_DTYPE),
                              (((1,), (1,)), ((), ())),
                              preferred_element_type=jnp.float32) + bl_ref[...]
    out_ref[0] = jnp.maximum(out, 0.0)


def _pick_seqs_per_block(B, L, target_rows=512):
    """Largest seqs-per-block s.t. rows%8==0, rows<=target, and (if possible) >=2 grid steps."""
    candidates = [s for s in range(1, B + 1)
                  if B % s == 0 and (s * L) % 8 == 0 and s * L <= target_rows]
    multi = [s for s in candidates if B // s >= 2]
    if multi:
        return max(multi)
    if candidates:
        return max(candidates)
    return B   # whole-array block (block dims == array dims, always layout-legal)


def duration_predictor(x, p, target_rows=512):
    """x: (B, L, D) f32 -> (B, L) f32."""
    B, L, D = x.shape
    spb = _pick_seqs_per_block(B, L, target_rows)
    G = B // spb
    M = spb * L
    F = p["g1"].shape[1]

    vec = lambda: pl.BlockSpec((1, F), lambda g: (0, 0))
    out = pl.pallas_call(
        functools.partial(_duration_predictor_kernel, seq_len=L),
        out_shape=jax.ShapeDtypeStruct((G, 1, M), jnp.float32),
        grid=(G,),
        in_specs=[
            pl.BlockSpec((M, D), lambda g: (g, 0)),                 # row block of encoder slab
            pl.BlockSpec((3, D, F), lambda g: (0, 0, 0)), vec(), vec(), vec(),
            pl.BlockSpec((3, F, F), lambda g: (0, 0, 0)), vec(), vec(), vec(),
            vec(), pl.BlockSpec((1, 1), lambda g: (0, 0)),
        ],
        out_specs=pl.BlockSpec((1, 1, M), lambda g: (g, 0, 0)),     # lane-major per block
        compiler_params=pltpu.CompilerParams(
            dimension_semantics=("parallel",),
            vmem_limit_bytes=_VMEM_LIMIT),
    )(x.reshape(B * L, D),
      p["w1"], p["b1"], p["g1"], p["be1"],
      p["w2"], p["b2"], p["g2"], p["be2"], p["wl"], p["bl"])
    return out.reshape(B, L)


# ----------------------------------------------------------------------------
# Kernel 2: fused length-regulator gather + pitch|energy VarPredictor +
#           fused bucketized-embedding add.  One grid step per batch element.
# ----------------------------------------------------------------------------
def _fused_lr_predictor_kernel(idx_ref, x_ref, tab_ref,
                               w1_ref, b1_ref, g1_ref, be1_ref,
                               w2_ref, b2_ref, g2_ref, be2_ref,
                               wl_ref, bl_ref,
                               res_ref, pred_ref):
    x = x_ref[0]                                              # (L, D) f32
    L = x.shape[0]
    idx = idx_ref[0]                                          # (T, 3) int32 [tok|pitch|energy]
    tok = idx[:, 0:1]                                         # == L for padded frames
    pid = idx[:, 1:2]
    eid = idx[:, 2:3]
    T = idx.shape[0]
    F2 = g1_ref.shape[1]                                      # 2 * filter_size
    F = F2 // 2

    # ---- length regulator: exact frame->token one-hot gather, kept f32 (bit-exact residual) ----
    tok_lane = jax.lax.broadcasted_iota(jnp.int32, (T, L), 1)
    sel = (tok == tok_lane).astype(jnp.float32)               # padded frames -> all-zero row
    lr = jnp.dot(sel, x, preferred_element_type=jnp.float32)  # (T, D)

    # ---- fused pitch|energy variance predictor (channels [pitch F | energy F]) ----
    row = jax.lax.broadcasted_iota(jnp.int32, (T, 1), 0)
    half_mask = jax.lax.broadcasted_iota(jnp.int32, (T, F2), 1) < F

    def conv3(h, w_ref, b_ref):
        prev = jnp.where(row > 0, pltpu.roll(h, shift=1, axis=0), 0.0)
        nxt = jnp.where(row < T - 1, pltpu.roll(h, shift=T - 1, axis=0), 0.0)
        y = (jnp.dot(prev.astype(_CONV_DTYPE), w_ref[0], preferred_element_type=jnp.float32)
             + jnp.dot(h.astype(_CONV_DTYPE), w_ref[1], preferred_element_type=jnp.float32)
             + jnp.dot(nxt.astype(_CONV_DTYPE), w_ref[2], preferred_element_type=jnp.float32))
        return y + b_ref[...]

    inv_f = 1.0 / F

    def dual_layer_norm(h, g_ref, be_ref):
        # LayerNorm over each predictor's own F channels (halves of the lane dim):
        # full-lane sums once, one masked pair for the pitch half, energy by subtraction.
        hh = h * h
        s_all = jnp.sum(h, axis=-1, keepdims=True)
        s2_all = jnp.sum(hh, axis=-1, keepdims=True)
        s_p = jnp.sum(jnp.where(half_mask, h, 0.0), axis=-1, keepdims=True)
        s2_p = jnp.sum(jnp.where(half_mask, hh, 0.0), axis=-1, keepdims=True)
        mu_p = s_p * inv_f
        mu_e = (s_all - s_p) * inv_f
        var_p = s2_p * inv_f - mu_p * mu_p
        var_e = (s2_all - s2_p) * inv_f - mu_e * mu_e
        mu = jnp.where(half_mask, mu_p, mu_e)
        var = jnp.where(half_mask, var_p, var_e)
        return (h - mu) * jax.lax.rsqrt(var + _LN_EPS) * g_ref[...] + be_ref[...]

    h = jnp.maximum(dual_layer_norm(conv3(lr, w1_ref, b1_ref), g1_ref, be1_ref), 0.0)
    h = jnp.maximum(dual_layer_norm(conv3(h, w2_ref, b2_ref), g2_ref, be2_ref), 0.0)

    # Linear(F -> 1) per predictor, packed lane-major: (2, 2F) x (T, 2F)^T -> (2, T)
    preds = jax.lax.dot_general(wl_ref[...], h.astype(_CONV_DTYPE),
                                (((1,), (1,)), ((), ())),
                                preferred_element_type=jnp.float32) + bl_ref[...]
    pred_ref[0] = jnp.maximum(preds, 0.0)                     # row 0 = pitch, row 1 = energy

    # ---- fused bucketized embeddings: single one-hot matmul vs stacked [pitch|energy] table ----
    NE2 = tab_ref.shape[0]
    NE = NE2 // 2
    lane = jax.lax.broadcasted_iota(jnp.int32, (T, NE2), 1)
    hot = jnp.logical_or(pid == lane, (eid + NE) == lane).astype(_CONV_DTYPE)
    emb = jnp.dot(hot, tab_ref[...], preferred_element_type=jnp.float32)   # p_emb + e_emb
    res_ref[0] = lr + emb


def fused_length_regulate_and_predict(params, encoder_output, idx, T):
    B, L, D = encoder_output.shape
    pe = params["pitch_energy"]
    tab = params["embedding_table"]                           # (2*NE, D) bf16
    NE2 = tab.shape[0]
    F2 = pe["g1"].shape[1]

    batch3 = lambda s: pl.BlockSpec(s, lambda b: (b, 0, 0))
    full3 = lambda s: pl.BlockSpec(s, lambda b: (0, 0, 0))
    full2 = lambda s: pl.BlockSpec(s, lambda b: (0, 0))

    result, preds = pl.pallas_call(
        _fused_lr_predictor_kernel,
        out_shape=(jax.ShapeDtypeStruct((B, T, D), jnp.float32),
                   jax.ShapeDtypeStruct((B, 2, T), jnp.float32)),
        grid=(B,),
        in_specs=[
            batch3((1, T, 3)),                                # packed token/pitch/energy indices
            batch3((1, L, D)),                                # encoder output
            full2((NE2, D)),                                  # stacked embedding tables
            full3((3, D, F2)), full2((1, F2)), full2((1, F2)), full2((1, F2)),
            full3((3, F2, F2)), full2((1, F2)), full2((1, F2)), full2((1, F2)),
            full2((2, F2)), full2((2, 1)),
        ],
        out_specs=(pl.BlockSpec((1, T, D), lambda b: (b, 0, 0)),
                   pl.BlockSpec((1, 2, T), lambda b: (b, 0, 0))),
        compiler_params=pltpu.CompilerParams(
            dimension_semantics=("parallel",),
            vmem_limit_bytes=_VMEM_LIMIT),
    )(idx, encoder_output, tab,
      pe["w1"], pe["b1"], pe["g1"], pe["be1"],
      pe["w2"], pe["b2"], pe["g2"], pe["be2"], pe["wl"], pe["bl"])
    return result, preds[:, 0, :], preds[:, 1, :]


# ----------------------------------------------------------------------------
# Forward (training path): tiny index-prep glue in plain JAX, heavy work in kernels.
# ----------------------------------------------------------------------------
def variance_adaptor_forward(params, encoder_output, length_target,
                             pitch_target, energy_target, mel_max_length):
    T = mel_max_length

    duration_pred = duration_predictor(encoder_output, params["dur"])          # (B, L)

    # frame -> phoneme token index (replaces the dense (B, T, L) alignment matrix)
    csum = jnp.cumsum(length_target.astype(jnp.int32), axis=1)                 # (B, L)
    frames = jnp.arange(T, dtype=jnp.int32)
    token_idx = jax.vmap(lambda c: jnp.searchsorted(c, frames, side="right"))(csum)

    # torch.bucketize(x, b, right=False) == searchsorted(b, x, side='left')
    pitch_idx = jnp.searchsorted(params["pitch_buckets"], pitch_target, side="left")
    energy_idx = jnp.searchsorted(params["energy_buckets"], energy_target, side="left")

    # pack all per-frame indices into one int32 (B, T, 3) block (single VMEM tile / DMA)
    idx = jnp.stack([token_idx, pitch_idx, energy_idx], axis=-1).astype(jnp.int32)

    result, pitch_pred, energy_pred = fused_length_regulate_and_predict(
        params, encoder_output, idx, T)
    return result, duration_pred, pitch_pred, energy_pred


# ----------------------------------------------------------------------------
# Deterministic parameter init + packing (shapes follow the nn.Module __init__).
# Conv weights stored as (K=3, Cin, Cout): tap 0 -> x[t-1], tap 1 -> x[t], tap 2 -> x[t+1].
# ----------------------------------------------------------------------------
def init_var_predictor(key, cin, filt):
    ks = jax.random.split(key, 3)
    s = 0.05
    return {
        "w1": s * jax.random.normal(ks[0], (3, cin, filt), jnp.float32),
        "b1": jnp.zeros((1, filt), jnp.float32),
        "g1": jnp.ones((1, filt), jnp.float32),
        "be1": jnp.zeros((1, filt), jnp.float32),
        "w2": s * jax.random.normal(ks[1], (3, filt, filt), jnp.float32),
        "b2": jnp.zeros((1, filt), jnp.float32),
        "g2": jnp.ones((1, filt), jnp.float32),
        "be2": jnp.zeros((1, filt), jnp.float32),
        "wl": s * jax.random.normal(ks[2], (1, filt), jnp.float32),
        "bl": jnp.zeros((1, 1), jnp.float32),
    }


def pack_single_predictor(p):
    """Duration predictor: conv + final-linear weights bf16, LN params kept f32."""
    return {
        "w1": p["w1"].astype(_CONV_DTYPE), "b1": p["b1"], "g1": p["g1"], "be1": p["be1"],
        "w2": p["w2"].astype(_CONV_DTYPE), "b2": p["b2"], "g2": p["g2"], "be2": p["be2"],
        "wl": p["wl"].astype(_CONV_DTYPE), "bl": p["bl"],
    }


def pack_fused_predictors(p, e):
    """Pack pitch (p) and energy (e) VarPredictors into one [pitch F | energy F] stack."""
    K, cin, f = p["w1"].shape
    cat = lambda a, b, ax: jnp.concatenate([a, b], axis=ax)
    w1 = cat(p["w1"], e["w1"], -1)                                   # (3, cin, 2f)
    zero = jnp.zeros((K, f, f), jnp.float32)
    w2 = cat(cat(p["w2"], zero, -1), cat(zero, e["w2"], -1), 1)      # (3, 2f, 2f) block-diag
    zf = jnp.zeros((1, f), jnp.float32)
    wl = cat(cat(p["wl"], zf, -1), cat(zf, e["wl"], -1), 0)          # (2, 2f)
    return {
        "w1": w1.astype(_CONV_DTYPE),
        "b1": cat(p["b1"], e["b1"], -1), "g1": cat(p["g1"], e["g1"], -1),
        "be1": cat(p["be1"], e["be1"], -1),
        "w2": w2.astype(_CONV_DTYPE),
        "b2": cat(p["b2"], e["b2"], -1), "g2": cat(p["g2"], e["g2"], -1),
        "be2": cat(p["be2"], e["be2"], -1),
        "wl": wl.astype(_CONV_DTYPE), "bl": cat(p["bl"], e["bl"], 0),  # (2, 1)
    }


def pack_embedding_tables(pitch_tab, energy_tab):
    """Stack the two (NE, D) tables along rows; bf16 so the one-hot lookup is MXU-native."""
    return jnp.concatenate([pitch_tab, energy_tab], axis=0).astype(_CONV_DTYPE)


if __name__ == "__main__":
    key = jax.random.PRNGKey(0)
    B, L, D = 2, 8, 32                 # batch, phoneme seq, encoder_dim
    filt = 32                          # predictor filter size (pitch/energy/duration)
    num_embed = 16
    min_pitch, max_pitch = 0.0, 10.0
    min_energy, max_energy = 0.0, 10.0

    k_x, k_d, k_p, k_e, k_pe, k_ee, k_pt, k_et = jax.random.split(key, 8)
    pitch_tab = 0.1 * jax.random.normal(k_pe, (num_embed, D), jnp.float32)
    energy_tab = 0.1 * jax.random.normal(k_ee, (num_embed, D), jnp.float32)
    params = {
        "dur": pack_single_predictor(init_var_predictor(k_d, D, filt)),
        "pitch_energy": pack_fused_predictors(init_var_predictor(k_p, D, filt),
                                              init_var_predictor(k_e, D, filt)),
        "embedding_table": pack_embedding_tables(pitch_tab, energy_tab),
        "pitch_buckets": jnp.linspace(min_pitch, max_pitch, num_embed - 1),
        "energy_buckets": jnp.linspace(min_energy, max_energy, num_embed - 1),
    }

    encoder_output = jax.random.normal(k_x, (B, L, D), jnp.float32)
    length_target = jnp.array([[2, 3, 1, 2, 1, 3, 2, 2],
                               [1, 2, 2, 3, 2, 1, 2, 3]], jnp.int32)
    mel_max_length = int(np.max(np.sum(np.asarray(length_target), axis=-1)))   # static T
    pitch_target = jax.random.uniform(k_pt, (B, mel_max_length),
                                      minval=min_pitch, maxval=max_pitch)
    energy_target = jax.random.uniform(k_et, (B, mel_max_length),
                                       minval=min_energy, maxval=max_energy)

    fwd = jax.jit(functools.partial(variance_adaptor_forward,
                                    mel_max_length=mel_max_length))
    result, dur_pred, pitch_pred, energy_pred = fwd(
        params, encoder_output, length_target, pitch_target, energy_target)
    jax.block_until_ready((result, dur_pred, pitch_pred, energy_pred))

    assert result.shape == (B, mel_max_length, D)
    assert dur_pred.shape == (B, L)
    assert pitch_pred.shape == (B, mel_max_length)
    assert energy_pred.shape == (B, mel_max_length)
    print("KERNEL_OK")
</pallas_src>

<mosaic_0001>
module attributes {stable_mosaic.version = 11 : i64} {
  func.func @_fused_lr_predictor_kernel(%arg0: i32, %arg1: memref<1x16x3xi32, #tpu.memory_space<vmem>>, %arg2: memref<1x8x32xf32, #tpu.memory_space<vmem>>, %arg3: memref<32x32xbf16, #tpu.memory_space<vmem>>, %arg4: memref<3x32x64xbf16, #tpu.memory_space<vmem>>, %arg5: memref<1x64xf32, #tpu.memory_space<vmem>>, %arg6: memref<1x64xf32, #tpu.memory_space<vmem>>, %arg7: memref<1x64xf32, #tpu.memory_space<vmem>>, %arg8: memref<3x64x64xbf16, #tpu.memory_space<vmem>>, %arg9: memref<1x64xf32, #tpu.memory_space<vmem>>, %arg10: memref<1x64xf32, #tpu.memory_space<vmem>>, %arg11: memref<1x64xf32, #tpu.memory_space<vmem>>, %arg12: memref<2x64xbf16, #tpu.memory_space<vmem>>, %arg13: memref<2x1xf32, #tpu.memory_space<vmem>>, %arg14: memref<1x16x32xf32, #tpu.memory_space<vmem>>, %arg15: memref<1x2x16xf32, #tpu.memory_space<vmem>>) attributes {dimension_semantics = [#tpu.dimension_semantics<parallel>], iteration_bounds = array<i64: 2>, scalar_prefetch = 0 : i64, scratch_operands = 0 : i64, tpu.core_type = #tpu.core_type<tc>, window_params = [{transform_indices = @transform_0, window_bounds = array<i64: 1, 16, 3>}, {transform_indices = @transform_1, window_bounds = array<i64: 1, 8, 32>}, {pipeline_mode = #tpu.pipeline_mode<synchronous>, transform_indices = @transform_2, window_bounds = array<i64: 32, 32>}, {pipeline_mode = #tpu.pipeline_mode<synchronous>, transform_indices = @transform_3, window_bounds = array<i64: 3, 32, 64>}, {pipeline_mode = #tpu.pipeline_mode<synchronous>, transform_indices = @transform_4, window_bounds = array<i64: 1, 64>}, {pipeline_mode = #tpu.pipeline_mode<synchronous>, transform_indices = @transform_5, window_bounds = array<i64: 1, 64>}, {pipeline_mode = #tpu.pipeline_mode<synchronous>, transform_indices = @transform_6, window_bounds = array<i64: 1, 64>}, {pipeline_mode = #tpu.pipeline_mode<synchronous>, transform_indices = @transform_7, window_bounds = array<i64: 3, 64, 64>}, {pipeline_mode = #tpu.pipeline_mode<synchronous>, transform_indices = @transform_8, window_bounds = array<i64: 1, 64>}, {pipeline_mode = #tpu.pipeline_mode<synchronous>, transform_indices = @transform_9, window_bounds = array<i64: 1, 64>}, {pipeline_mode = #tpu.pipeline_mode<synchronous>, transform_indices = @transform_10, window_bounds = array<i64: 1, 64>}, {pipeline_mode = #tpu.pipeline_mode<synchronous>, transform_indices = @transform_11, window_bounds = array<i64: 2, 64>}, {pipeline_mode = #tpu.pipeline_mode<synchronous>, transform_indices = @transform_12, window_bounds = array<i64: 2, 1>}, {transform_indices = @transform_13, window_bounds = array<i64: 1, 16, 32>}, {transform_indices = @transform_14, window_bounds = array<i64: 1, 2, 16>}]} {
    %c0 = arith.constant 0 : index
    %c0_0 = arith.constant 0 : index
    %c0_1 = arith.constant 0 : index
    %0 = vector.load %arg2[%c0, %c0_0, %c0_1] : memref<1x8x32xf32, #tpu.memory_space<vmem>>, vector<1x8x32xf32>
    %1 = vector.shape_cast %0 : vector<1x8x32xf32> to vector<8x32xf32>
    %c0_2 = arith.constant 0 : index
    %c0_3 = arith.constant 0 : index
    %c0_4 = arith.constant 0 : index
    %2 = vector.load %arg1[%c0_2, %c0_3, %c0_4] : memref<1x16x3xi32, #tpu.memory_space<vmem>>, vector<1x16x3xi32>
    %3 = vector.shape_cast %2 : vector<1x16x3xi32> to vector<16x3xi32>
    %4 = vector.extract_strided_slice %3 {offsets = [0, 0], sizes = [16, 1], strides = [1, 1]} : vector<16x3xi32> to vector<16x1xi32>
    %5 = vector.extract_strided_slice %3 {offsets = [0, 1], sizes = [16, 1], strides = [1, 1]} : vector<16x3xi32> to vector<16x1xi32>
    %6 = vector.extract_strided_slice %3 {offsets = [0, 2], sizes = [16, 1], strides = [1, 1]} : vector<16x3xi32> to vector<16x1xi32>
    %7 = tpu.iota {dimensions = array<i32: 1>} : vector<16x8xi32>
    %8 = vector.broadcast %4 : vector<16x1xi32> to vector<16x8xi32>
    %9 = arith.cmpi eq, %8, %7 : vector<16x8xi32>
    %10 = arith.extui %9 : vector<16x8xi1> to vector<16x8xi32>
    %11 = arith.sitofp %10 : vector<16x8xi32> to vector<16x8xf32>
    %cst = arith.constant dense<0.000000e+00> : vector<16x32xf32>
    %12 = tpu.matmul %11, %1, %cst {dimension_numbers = #tpu.dot_dimension_numbers<[1], [0], [0], [1], [0, 0, 1, 1], [], []>} : vector<16x8xf32>, vector<8x32xf32>, vector<16x32xf32> -> vector<16x32xf32>
    %13 = tpu.iota {dimensions = array<i32: 0>} : vector<16x1xi32>
    %14 = tpu.iota {dimensions = array<i32: 1>} : vector<16x64xi32>
    %c32_i32 = arith.constant 32 : i32
    %15 = vector.broadcast %c32_i32 : i32 to vector<16x64xi32>
    %16 = arith.cmpi slt, %14, %15 : vector<16x64xi32>
    %c0_i32 = arith.constant 0 : i32
    %17 = vector.broadcast %c0_i32 : i32 to vector<16x1xi32>
    %18 = arith.cmpi sgt, %13, %17 : vector<16x1xi32>
    %c1_i32 = arith.constant 1 : i32
    %19 = tpu.dynamic_rotate %12 by %c1_i32 dim 0 : vector<16x32xf32>, i32 -> vector<16x32xf32>
    %cst_5 = arith.constant 0.000000e+00 : f32
    %20 = vector.shape_cast %18 : vector<16x1xi1> to vector<16x1xi1>
    %21 = vector.broadcast %20 : vector<16x1xi1> to vector<16x32xi1>
    %22 = vector.broadcast %cst_5 : f32 to vector<16x32xf32>
    %23 = arith.select %21, %19, %22 : vector<16x32xi1>, vector<16x32xf32>
    %c15_i32 = arith.constant 15 : i32
    %24 = vector.broadcast %c15_i32 : i32 to vector<16x1xi32>
    %25 = arith.cmpi slt, %13, %24 : vector<16x1xi32>
    %c15_i32_6 = arith.constant 15 : i32
    %26 = tpu.dynamic_rotate %12 by %c15_i32_6 dim 0 : vector<16x32xf32>, i32 -> vector<16x32xf32>
    %cst_7 = arith.constant 0.000000e+00 : f32
    %27 = vector.shape_cast %25 : vector<16x1xi1> to vector<16x1xi1>
    %28 = vector.broadcast %27 : vector<16x1xi1> to vector<16x32xi1>
    %29 = vector.broadcast %cst_7 : f32 to vector<16x32xf32>
    %30 = arith.select %28, %26, %29 : vector<16x32xi1>, vector<16x32xf32>
    %31 = arith.truncf %23 : vector<16x32xf32> to vector<16x32xbf16>
    %c0_8 = arith.constant 0 : index
    %c0_9 = arith.constant 0 : index
    %c0_10 = arith.constant 0 : index
    %32 = vector.load %arg4[%c0_8, %c0_9, %c0_10] : memref<3x32x64xbf16, #tpu.memory_space<vmem>>, vector<1x32x64xbf16>
    %33 = vector.shape_cast %32 : vector<1x32x64xbf16> to vector<32x64xbf16>
    %cst_11 = arith.constant dense<0.000000e+00> : vector<16x64xf32>
    %34 = tpu.matmul %31, %33, %cst_11 {dimension_numbers = #tpu.dot_dimension_numbers<[1], [0], [0], [1], [0, 0, 1, 1], [], []>} : vector<16x32xbf16>, vector<32x64xbf16>, vector<16x64xf32> -> vector<16x64xf32>
    %35 = arith.truncf %12 : vector<16x32xf32> to vector<16x32xbf16>
    %c1 = arith.constant 1 : index
    %c0_12 = arith.constant 0 : index
    %c0_13 = arith.constant 0 : index
    %36 = vector.load %arg4[%c1, %c0_12, %c0_13] : memref<3x32x64xbf16, #tpu.memory_space<vmem>>, vector<1x32x64xbf16>
    %37 = vector.shape_cast %36 : vector<1x32x64xbf16> to vector<32x64xbf16>
    %cst_14 = arith.constant dense<0.000000e+00> : vector<16x64xf32>
    %38 = tpu.matmul %35, %37, %cst_14 {dimension_numbers = #tpu.dot_dimension_numbers<[1], [0], [0], [1], [0, 0, 1, 1], [], []>} : vector<16x32xbf16>, vector<32x64xbf16>, vector<16x64xf32> -> vector<16x64xf32>
    %39 = arith.addf %34, %38 : vector<16x64xf32>
    %40 = arith.truncf %30 : vector<16x32xf32> to vector<16x32xbf16>
    %c2 = arith.constant 2 : index
    %c0_15 = arith.constant 0 : index
    %c0_16 = arith.constant 0 : index
    %41 = vector.load %arg4[%c2, %c0_15, %c0_16] : memref<3x32x64xbf16, #tpu.memory_space<vmem>>, vector<1x32x64xbf16>
    %42 = vector.shape_cast %41 : vector<1x32x64xbf16> to vector<32x64xbf16>
    %cst_17 = arith.constant dense<0.000000e+00> : vector<16x64xf32>
    %43 = tpu.matmul %40, %42, %cst_17 {dimension_numbers = #tpu.dot_dimension_numbers<[1], [0], [0], [1], [0, 0, 1, 1], [], []>} : vector<16x32xbf16>, vector<32x64xbf16>, vector<16x64xf32> -> vector<16x64xf32>
    %44 = arith.addf %39, %43 : vector<16x64xf32>
    %c0_18 = arith.constant 0 : index
    %c0_19 = arith.constant 0 : index
    %45 = vector.load %arg5[%c0_18, %c0_19] : memref<1x64xf32, #tpu.memory_space<vmem>>, vector<1x64xf32>
    %46 = vector.broadcast %45 : vector<1x64xf32> to vector<16x64xf32>
    %47 = arith.addf %44, %46 : vector<16x64xf32>
    %48 = arith.mulf %47, %47 : vector<16x64xf32>
    %cst_20 = arith.constant dense<0.000000e+00> : vector<16xf32>
    %49 = vector.multi_reduction <add>, %47, %cst_20 [1] : vector<16x64xf32> to vector<16xf32>
    %50 = vector.shape_cast %49 : vector<16xf32> to vector<16x1xf32>
    %cst_21 = arith.constant dense<0.000000e+00> : vector<16xf32>
    %51 = vector.multi_reduction <add>, %48, %cst_21 [1] : vector<16x64xf32> to vector<16xf32>
    %52 = vector.shape_cast %51 : vector<16xf32> to vector<16x1xf32>
    %cst_22 = arith.constant 0.000000e+00 : f32
    %53 = vector.broadcast %cst_22 : f32 to vector<16x64xf32>
    %54 = arith.select %16, %47, %53 : vector<16x64xi1>, vector<16x64xf32>
    %cst_23 = arith.constant dense<0.000000e+00> : vector<16xf32>
    %55 = vector.multi_reduction <add>, %54, %cst_23 [1] : vector<16x64xf32> to vector<16xf32>
    %56 = vector.shape_cast %55 : vector<16xf32> to vector<16x1xf32>
    %cst_24 = arith.constant 0.000000e+00 : f32
    %57 = vector.broadcast %cst_24 : f32 to vector<16x64xf32>
    %58 = arith.select %16, %48, %57 : vector<16x64xi1>, vector<16x64xf32>
    %cst_25 = arith.constant dense<0.000000e+00> : vector<16xf32>
    %59 = vector.multi_reduction <add>, %58, %cst_25 [1] : vector<16x64xf32> to vector<16xf32>
    %60 = vector.shape_cast %59 : vector<16xf32> to vector<16x1xf32>
    %cst_26 = arith.constant 3.125000e-02 : f32
    %61 = vector.broadcast %cst_26 : f32 to vector<16x1xf32>
    %62 = arith.mulf %56, %61 : vector<16x1xf32>
    %63 = arith.subf %50, %56 : vector<16x1xf32>
    %cst_27 = arith.constant 3.125000e-02 : f32
    %64 = vector.broadcast %cst_27 : f32 to vector<16x1xf32>
    %65 = arith.mulf %63, %64 : vector<16x1xf32>
    %cst_28 = arith.constant 3.125000e-02 : f32
    %66 = vector.broadcast %cst_28 : f32 to vector<16x1xf32>
    %67 = arith.mulf %60, %66 : vector<16x1xf32>
    %68 = arith.mulf %62, %62 : vector<16x1xf32>
    %69 = arith.subf %67, %68 : vector<16x1xf32>
    %70 = arith.subf %52, %60 : vector<16x1xf32>
    %cst_29 = arith.constant 3.125000e-02 : f32
    %71 = vector.broadcast %cst_29 : f32 to vector<16x1xf32>
    %72 = arith.mulf %70, %71 : vector<16x1xf32>
    %73 = arith.mulf %65, %65 : vector<16x1xf32>
    %74 = arith.subf %72, %73 : vector<16x1xf32>
    %75 = vector.shape_cast %62 : vector<16x1xf32> to vector<16x1xf32>
    %76 = vector.broadcast %75 : vector<16x1xf32> to vector<16x64xf32>
    %77 = vector.shape_cast %65 : vector<16x1xf32> to vector<16x1xf32>
    %78 = vector.broadcast %77 : vector<16x1xf32> to vector<16x64xf32>
    %79 = arith.select %16, %76, %78 : vector<16x64xi1>, vector<16x64xf32>
    %80 = vector.shape_cast %69 : vector<16x1xf32> to vector<16x1xf32>
    %81 = vector.broadcast %80 : vector<16x1xf32> to vector<16x64xf32>
    %82 = vector.shape_cast %74 : vector<16x1xf32> to vector<16x1xf32>
    %83 = vector.broadcast %82 : vector<16x1xf32> to vector<16x64xf32>
    %84 = arith.select %16, %81, %83 : vector<16x64xi1>, vector<16x64xf32>
    %85 = arith.subf %47, %79 : vector<16x64xf32>
    %cst_30 = arith.constant 9.99999974E-6 : f32
    %86 = vector.broadcast %cst_30 : f32 to vector<16x64xf32>
    %87 = arith.addf %84, %86 : vector<16x64xf32>
    %88 = math.rsqrt %87 : vector<16x64xf32>
    %89 = arith.mulf %85, %88 : vector<16x64xf32>
    %c0_31 = arith.constant 0 : index
    %c0_32 = arith.constant 0 : index
    %90 = vector.load %arg6[%c0_31, %c0_32] : memref<1x64xf32, #tpu.memory_space<vmem>>, vector<1x64xf32>
    %91 = vector.broadcast %90 : vector<1x64xf32> to vector<16x64xf32>
    %92 = arith.mulf %89, %91 : vector<16x64xf32>
    %c0_33 = arith.constant 0 : index
    %c0_34 = arith.constant 0 : index
    %93 = vector.load %arg7[%c0_33, %c0_34] : memref<1x64xf32, #tpu.memory_space<vmem>>, vector<1x64xf32>
    %94 = vector.broadcast %93 : vector<1x64xf32> to vector<16x64xf32>
    %95 = arith.addf %92, %94 : vector<16x64xf32>
    %cst_35 = arith.constant 0.000000e+00 : f32
    %96 = vector.broadcast %cst_35 : f32 to vector<16x64xf32>
    %97 = arith.maximumf %95, %96 : vector<16x64xf32>
    %c0_i32_36 = arith.constant 0 : i32
    %98 = vector.broadcast %c0_i32_36 : i32 to vector<16x1xi32>
    %99 = arith.cmpi sgt, %13, %98 : vector<16x1xi32>
    %c1_i32_37 = arith.constant 1 : i32
    %100 = tpu.dynamic_rotate %97 by %c1_i32_37 dim 0 : vector<16x64xf32>, i32 -> vector<16x64xf32>
    %cst_38 = arith.constant 0.000000e+00 : f32
    %101 = vector.shape_cast %99 : vector<16x1xi1> to vector<16x1xi1>
    %102 = vector.broadcast %101 : vector<16x1xi1> to vector<16x64xi1>
    %103 = vector.broadcast %cst_38 : f32 to vector<16x64xf32>
    %104 = arith.select %102, %100, %103 : vector<16x64xi1>, vector<16x64xf32>
    %c15_i32_39 = arith.constant 15 : i32
    %105 = vector.broadcast %c15_i32_39 : i32 to vector<16x1xi32>
    %106 = arith.cmpi slt, %13, %105 : vector<16x1xi32>
    %c15_i32_40 = arith.constant 15 : i32
    %107 = tpu.dynamic_rotate %97 by %c15_i32_40 dim 0 : vector<16x64xf32>, i32 -> vector<16x64xf32>
    %cst_41 = arith.constant 0.000000e+00 : f32
    %108 = vector.shape_cast %106 : vector<16x1xi1> to vector<16x1xi1>
    %109 = vector.broadcast %108 : vector<16x1xi1> to vector<16x64xi1>
    %110 = vector.broadcast %cst_41 : f32 to vector<16x64xf32>
    %111 = arith.select %109, %107, %110 : vector<16x64xi1>, vector<16x64xf32>
    %112 = arith.truncf %104 : vector<16x64xf32> to vector<16x64xbf16>
    %c0_42 = arith.constant 0 : index
    %c0_43 = arith.constant 0 : index
    %c0_44 = arith.constant 0 : index
    %113 = vector.load %arg8[%c0_42, %c0_43, %c0_44] : memref<3x64x64xbf16, #tpu.memory_space<vmem>>, vector<1x64x64xbf16>
    %114 = vector.shape_cast %113 : vector<1x64x64xbf16> to vector<64x64xbf16>
    %cst_45 = arith.constant dense<0.000000e+00> : vector<16x64xf32>
    %115 = tpu.matmul %112, %114, %cst_45 {dimension_numbers = #tpu.dot_dimension_numbers<[1], [0], [0], [1], [0, 0, 1, 1], [], []>} : vector<16x64xbf16>, vector<64x64xbf16>, vector<16x64xf32> -> vector<16x64xf32>
    %116 = arith.truncf %97 : vector<16x64xf32> to vector<16x64xbf16>
    %c1_46 = arith.constant 1 : index
    %c0_47 = arith.constant 0 : index
    %c0_48 = arith.constant 0 : index
    %117 = vector.load %arg8[%c1_46, %c0_47, %c0_48] : memref<3x64x64xbf16, #tpu.memory_space<vmem>>, vector<1x64x64xbf16>
    %118 = vector.shape_cast %117 : vector<1x64x64xbf16> to vector<64x64xbf16>
    %cst_49 = arith.constant dense<0.000000e+00> : vector<16x64xf32>
    %119 = tpu.matmul %116, %118, %cst_49 {dimension_numbers = #tpu.dot_dimension_numbers<[1], [0], [0], [1], [0, 0, 1, 1], [], []>} : vector<16x64xbf16>, vector<64x64xbf16>, vector<16x64xf32> -> vector<16x64xf32>
    %120 = arith.addf %115, %119 : vector<16x64xf32>
    %121 = arith.truncf %111 : vector<16x64xf32> to vector<16x64xbf16>
    %c2_50 = arith.constant 2 : index
    %c0_51 = arith.constant 0 : index
    %c0_52 = arith.constant 0 : index
    %122 = vector.load %arg8[%c2_50, %c0_51, %c0_52] : memref<3x64x64xbf16, #tpu.memory_space<vmem>>, vector<1x64x64xbf16>
    %123 = vector.shape_cast %122 : vector<1x64x64xbf16> to vector<64x64xbf16>
    %cst_53 = arith.constant dense<0.000000e+00> : vector<16x64xf32>
    %124 = tpu.matmul %121, %123, %cst_53 {dimension_numbers = #tpu.dot_dimension_numbers<[1], [0], [0], [1], [0, 0, 1, 1], [], []>} : vector<16x64xbf16>, vector<64x64xbf16>, vector<16x64xf32> -> vector<16x64xf32>
    %125 = arith.addf %120, %124 : vector<16x64xf32>
    %c0_54 = arith.constant 0 : index
    %c0_55 = arith.constant 0 : index
    %126 = vector.load %arg9[%c0_54, %c0_55] : memref<1x64xf32, #tpu.memory_space<vmem>>, vector<1x64xf32>
    %127 = vector.broadcast %126 : vector<1x64xf32> to vector<16x64xf32>
    %128 = arith.addf %125, %127 : vector<16x64xf32>
    %129 = arith.mulf %128, %128 : vector<16x64xf32>
    %cst_56 = arith.constant dense<0.000000e+00> : vector<16xf32>
    %130 = vector.multi_reduction <add>, %128, %cst_56 [1] : vector<16x64xf32> to vector<16xf32>
    %131 = vector.shape_cast %130 : vector<16xf32> to vector<16x1xf32>
    %cst_57 = arith.constant dense<0.000000e+00> : vector<16xf32>
    %132 = vector.multi_reduction <add>, %129, %cst_57 [1] : vector<16x64xf32> to vector<16xf32>
    %133 = vector.shape_cast %132 : vector<16xf32> to vector<16x1xf32>
    %cst_58 = arith.constant 0.000000e+00 : f32
    %134 = vector.broadcast %cst_58 : f32 to vector<16x64xf32>
    %135 = arith.select %16, %128, %134 : vector<16x64xi1>, vector<16x64xf32>
    %cst_59 = arith.constant dense<0.000000e+00> : vector<16xf32>
    %136 = vector.multi_reduction <add>, %135, %cst_59 [1] : vector<16x64xf32> to vector<16xf32>
    %137 = vector.shape_cast %136 : vector<16xf32> to vector<16x1xf32>
    %cst_60 = arith.constant 0.000000e+00 : f32
    %138 = vector.broadcast %cst_60 : f32 to vector<16x64xf32>
    %139 = arith.select %16, %129, %138 : vector<16x64xi1>, vector<16x64xf32>
    %cst_61 = arith.constant dense<0.000000e+00> : vector<16xf32>
    %140 = vector.multi_reduction <add>, %139, %cst_61 [1] : vector<16x64xf32> to vector<16xf32>
    %141 = vector.shape_cast %140 : vector<16xf32> to vector<16x1xf32>
    %cst_62 = arith.constant 3.125000e-02 : f32
    %142 = vector.broadcast %cst_62 : f32 to vector<16x1xf32>
    %143 = arith.mulf %137, %142 : vector<16x1xf32>
    %144 = arith.subf %131, %137 : vector<16x1xf32>
    %cst_63 = arith.constant 3.125000e-02 : f32
    %145 = vector.broadcast %cst_63 : f32 to vector<16x1xf32>
    %146 = arith.mulf %144, %145 : vector<16x1xf32>
    %cst_64 = arith.constant 3.125000e-02 : f32
    %147 = vector.broadcast %cst_64 : f32 to vector<16x1xf32>
    %148 = arith.mulf %141, %147 : vector<16x1xf32>
    %149 = arith.mulf %143, %143 : vector<16x1xf32>
    %150 = arith.subf %148, %149 : vector<16x1xf32>
    %151 = arith.subf %133, %141 : vector<16x1xf32>
    %cst_65 = arith.constant 3.125000e-02 : f32
    %152 = vector.broadcast %cst_65 : f32 to vector<16x1xf32>
    %153 = arith.mulf %151, %152 : vector<16x1xf32>
    %154 = arith.mulf %146, %146 : vector<16x1xf32>
    %155 = arith.subf %153, %154 : vector<16x1xf32>
    %156 = vector.shape_cast %143 : vector<16x1xf32> to vector<16x1xf32>
    %157 = vector.broadcast %156 : vector<16x1xf32> to vector<16x64xf32>
    %158 = vector.shape_cast %146 : vector<16x1xf32> to vector<16x1xf32>
    %159 = vector.broadcast %158 : vector<16x1xf32> to vector<16x64xf32>
    %160 = arith.select %16, %157, %159 : vector<16x64xi1>, vector<16x64xf32>
    %161 = vector.shape_cast %150 : vector<16x1xf32> to vector<16x1xf32>
    %162 = vector.broadcast %161 : vector<16x1xf32> to vector<16x64xf32>
    %163 = vector.shape_cast %155 : vector<16x1xf32> to vector<16x1xf32>
    %164 = vector.broadcast %163 : vector<16x1xf32> to vector<16x64xf32>
    %165 = arith.select %16, %162, %164 : vector<16x64xi1>, vector<16x64xf32>
    %166 = arith.subf %128, %160 : vector<16x64xf32>
    %cst_66 = arith.constant 9.99999974E-6 : f32
    %167 = vector.broadcast %cst_66 : f32 to vector<16x64xf32>
    %168 = arith.addf %165, %167 : vector<16x64xf32>
    %169 = math.rsqrt %168 : vector<16x64xf32>
    %170 = arith.mulf %166, %169 : vector<16x64xf32>
    %c0_67 = arith.constant 0 : index
    %c0_68 = arith.constant 0 : index
    %171 = vector.load %arg10[%c0_67, %c0_68] : memref<1x64xf32, #tpu.memory_space<vmem>>, vector<1x64xf32>
    %172 = vector.broadcast %171 : vector<1x64xf32> to vector<16x64xf32>
    %173 = arith.mulf %170, %172 : vector<16x64xf32>
    %c0_69 = arith.constant 0 : index
    %c0_70 = arith.constant 0 : index
    %174 = vector.load %arg11[%c0_69, %c0_70] : memref<1x64xf32, #tpu.memory_space<vmem>>, vector<1x64xf32>
    %175 = vector.broadcast %174 : vector<1x64xf32> to vector<16x64xf32>
    %176 = arith.addf %173, %175 : vector<16x64xf32>
    %cst_71 = arith.constant 0.000000e+00 : f32
    %177 = vector.broadcast %cst_71 : f32 to vector<16x64xf32>
    %178 = arith.maximumf %176, %177 : vector<16x64xf32>
    %c0_72 = arith.constant 0 : index
    %c0_73 = arith.constant 0 : index
    %179 = vector.load %arg12[%c0_72, %c0_73] : memref<2x64xbf16, #tpu.memory_space<vmem>>, vector<2x64xbf16>
    %180 = arith.truncf %178 : vector<16x64xf32> to vector<16x64xbf16>
    %cst_74 = arith.constant dense<0.000000e+00> : vector<2x16xf32>
    %181 = tpu.matmul %179, %180, %cst_74 {dimension_numbers = #tpu.dot_dimension_numbers<[1], [1], [0], [0], [0, 0, 1, 0], [], []>} : vector<2x64xbf16>, vector<16x64xbf16>, vector<2x16xf32> -> vector<2x16xf32>
    %c0_75 = arith.constant 0 : index
    %c0_76 = arith.constant 0 : index
    %182 = vector.load %arg13[%c0_75, %c0_76] : memref<2x1xf32, #tpu.memory_space<vmem>>, vector<2x1xf32>
    %183 = vector.broadcast %182 : vector<2x1xf32> to vector<2x16xf32>
    %184 = arith.addf %181, %183 : vector<2x16xf32>
    %cst_77 = arith.constant 0.000000e+00 : f32
    %185 = vector.broadcast %cst_77 : f32 to vector<2x16xf32>
    %186 = arith.maximumf %184, %185 : vector<2x16xf32>
    %c0_78 = arith.constant 0 : index
    %c0_79 = arith.constant 0 : index
    %c0_80 = arith.constant 0 : index
    %187 = vector.load %arg15[%c0_78, %c0_79, %c0_80] : memref<1x2x16xf32, #tpu.memory_space<vmem>>, vector<1x2x16xf32>
    %188 = vector.shape_cast %187 : vector<1x2x16xf32> to vector<2x16xf32>
    %189 = vector.shape_cast %186 : vector<2x16xf32> to vector<1x2x16xf32>
    tpu.vector_store %arg15[%c0_78, %c0_79, %c0_80], %189 {strides = array<i32>} : memref<1x2x16xf32, #tpu.memory_space<vmem>>, vector<1x2x16xf32>,
    %190 = tpu.iota {dimensions = array<i32: 1>} : vector<16x32xi32>
    %191 = vector.broadcast %5 : vector<16x1xi32> to vector<16x32xi32>
    %192 = arith.cmpi eq, %191, %190 : vector<16x32xi32>
    %c16_i32 = arith.constant 16 : i32
    %193 = vector.broadcast %c16_i32 : i32 to vector<16x1xi32>
    %194 = arith.addi %6, %193 : vector<16x1xi32>
    %195 = vector.broadcast %194 : vector<16x1xi32> to vector<16x32xi32>
    %196 = arith.cmpi eq, %195, %190 : vector<16x32xi32>
    %197 = arith.ori %192, %196 : vector<16x32xi1>
    %198 = arith.extui %197 : vector<16x32xi1> to vector<16x32xi32>
    %199 = arith.sitofp %198 : vector<16x32xi32> to vector<16x32xf32>
    %200 = arith.truncf %199 : vector<16x32xf32> to vector<16x32xbf16>
    %c0_81 = arith.constant 0 : index
    %c0_82 = arith.constant 0 : index
    %201 = vector.load %arg3[%c0_81, %c0_82] : memref<32x32xbf16, #tpu.memory_space<vmem>>, vector<32x32xbf16>
    %cst_83 = arith.constant dense<0.000000e+00> : vector<16x32xf32>
    %202 = tpu.matmul %200, %201, %cst_83 {dimension_numbers = #tpu.dot_dimension_numbers<[1], [0], [0], [1], [0, 0, 1, 1], [], []>} : vector<16x32xbf16>, vector<32x32xbf16>, vector<16x32xf32> -> vector<16x32xf32>
    %203 = arith.addf %12, %202 : vector<16x32xf32>
    %c0_84 = arith.constant 0 : index
    %c0_85 = arith.constant 0 : index
    %c0_86 = arith.constant 0 : index
    %204 = vector.load %arg14[%c0_84, %c0_85, %c0_86] : memref<1x16x32xf32, #tpu.memory_space<vmem>>, vector<1x16x32xf32>
    %205 = vector.shape_cast %204 : vector<1x16x32xf32> to vector<16x32xf32>
    %206 = vector.shape_cast %203 : vector<16x32xf32> to vector<1x16x32xf32>
    tpu.vector_store %arg14[%c0_84, %c0_85, %c0_86], %206 {strides = array<i32>} : memref<1x16x32xf32, #tpu.memory_space<vmem>>, vector<1x16x32xf32>,
    return
  }
  func.func @transform_0(%arg0: i32) -> (i32, i32, i32) {
    %c0_i32 = arith.constant 0 : i32
    %c0_i32_0 = arith.constant 0 : i32
    %c0_i32_1 = arith.constant 0 : i32
    return %arg0, %c0_i32, %c0_i32_0 : i32, i32, i32
  }
  func.func @transform_1(%arg0: i32) -> (i32, i32, i32) {
    %c0_i32 = arith.constant 0 : i32
    %c0_i32_0 = arith.constant 0 : i32
    %c0_i32_1 = arith.constant 0 : i32
    return %arg0, %c0_i32, %c0_i32_0 : i32, i32, i32
  }
  func.func @transform_2(%arg0: i32) -> (i32, i32) {
    %c0_i32 = arith.constant 0 : i32
    %c0_i32_0 = arith.constant 0 : i32
    %c0_i32_1 = arith.constant 0 : i32
    return %c0_i32, %c0_i32_0 : i32, i32
  }
  func.func @transform_3(%arg0: i32) -> (i32, i32, i32) {
    %c0_i32 = arith.constant 0 : i32
    %c0_i32_0 = arith.constant 0 : i32
    %c0_i32_1 = arith.constant 0 : i32
    %c0_i32_2 = arith.constant 0 : i32
    return %c0_i32, %c0_i32_0, %c0_i32_1 : i32, i32, i32
  }
  func.func @transform_4(%arg0: i32) -> (i32, i32) {
    %c0_i32 = arith.constant 0 : i32
    %c0_i32_0 = arith.constant 0 : i32
    %c0_i32_1 = arith.constant 0 : i32
    return %c0_i32, %c0_i32_0 : i32, i32
  }
  func.func @transform_5(%arg0: i32) -> (i32, i32) {
    %c0_i32 = arith.constant 0 : i32
    %c0_i32_0 = arith.constant 0 : i32
    %c0_i32_1 = arith.constant 0 : i32
    return %c0_i32, %c0_i32_0 : i32, i32
  }
  func.func @transform_6(%arg0: i32) -> (i32, i32) {
    %c0_i32 = arith.constant 0 : i32
    %c0_i32_0 = arith.constant 0 : i32
    %c0_i32_1 = arith.constant 0 : i32
    return %c0_i32, %c0_i32_0 : i32, i32
  }
  func.func @transform_7(%arg0: i32) -> (i32, i32, i32) {
    %c0_i32 = arith.constant 0 : i32
    %c0_i32_0 = arith.constant 0 : i32
    %c0_i32_1 = arith.constant 0 : i32
    %c0_i32_2 = arith.constant 0 : i32
    return %c0_i32, %c0_i32_0, %c0_i32_1 : i32, i32, i32
  }
  func.func @transform_8(%arg0: i32) -> (i32, i32) {
    %c0_i32 = arith.constant 0 : i32
    %c0_i32_0 = arith.constant 0 : i32
    %c0_i32_1 = arith.constant 0 : i32
    return %c0_i32, %c0_i32_0 : i32, i32
  }
  func.func @transform_9(%arg0: i32) -> (i32, i32) {
    %c0_i32 = arith.constant 0 : i32
    %c0_i32_0 = arith.constant 0 : i32
    %c0_i32_1 = arith.constant 0 : i32
    return %c0_i32, %c0_i32_0 : i32, i32
  }
  func.func @transform_10(%arg0: i32) -> (i32, i32) {
    %c0_i32 = arith.constant 0 : i32
    %c0_i32_0 = arith.constant 0 : i32
    %c0_i32_1 = arith.constant 0 : i32
    return %c0_i32, %c0_i32_0 : i32, i32
  }
  func.func @transform_11(%arg0: i32) -> (i32, i32) {
    %c0_i32 = arith.constant 0 : i32
    %c0_i32_0 = arith.constant 0 : i32
    %c0_i32_1 = arith.constant 0 : i32
    return %c0_i32, %c0_i32_0 : i32, i32
  }
  func.func @transform_12(%arg0: i32) -> (i32, i32) {
    %c0_i32 = arith.constant 0 : i32
    %c0_i32_0 = arith.constant 0 : i32
    %c0_i32_1 = arith.constant 0 : i32
    return %c0_i32, %c0_i32_0 : i32, i32
  }
  func.func @transform_13(%arg0: i32) -> (i32, i32, i32) {
    %c0_i32 = arith.constant 0 : i32
    %c0_i32_0 = arith.constant 0 : i32
    %c0_i32_1 = arith.constant 0 : i32
    return %arg0, %c0_i32, %c0_i32_0 : i32, i32, i32
  }
  func.func @transform_14(%arg0: i32) -> (i32, i32, i32) {
    %c0_i32 = arith.constant 0 : i32
    %c0_i32_0 = arith.constant 0 : i32
    %c0_i32_1 = arith.constant 0 : i32
    return %arg0, %c0_i32, %c0_i32_0 : i32, i32, i32
  }
}

module attributes {stable_mosaic.version = 11 : i64} {
  func.func @_duration_predictor_kernel(%arg0: i32, %arg1: memref<8x32xf32, #tpu.memory_space<vmem>>, %arg2: memref<3x32x32xbf16, #tpu.memory_space<vmem>>, %arg3: memref<1x32xf32, #tpu.memory_space<vmem>>, %arg4: memref<1x32xf32, #tpu.memory_space<vmem>>, %arg5: memref<1x32xf32, #tpu.memory_space<vmem>>, %arg6: memref<3x32x32xbf16, #tpu.memory_space<vmem>>, %arg7: memref<1x32xf32, #tpu.memory_space<vmem>>, %arg8: memref<1x32xf32, #tpu.memory_space<vmem>>, %arg9: memref<1x32xf32, #tpu.memory_space<vmem>>, %arg10: memref<1x32xbf16, #tpu.memory_space<vmem>>, %arg11: memref<1x1xf32, #tpu.memory_space<vmem>>, %arg12: memref<1x1x8xf32, #tpu.memory_space<vmem>>) attributes {dimension_semantics = [#tpu.dimension_semantics<parallel>], iteration_bounds = array<i64: 2>, scalar_prefetch = 0 : i64, scratch_operands = 0 : i64, tpu.core_type = #tpu.core_type<tc>, window_params = [{transform_indices = @transform_0, window_bounds = array<i64: 8, 32>}, {pipeline_mode = #tpu.pipeline_mode<synchronous>, transform_indices = @transform_1, window_bounds = array<i64: 3, 32, 32>}, {pipeline_mode = #tpu.pipeline_mode<synchronous>, transform_indices = @transform_2, window_bounds = array<i64: 1, 32>}, {pipeline_mode = #tpu.pipeline_mode<synchronous>, transform_indices = @transform_3, window_bounds = array<i64: 1, 32>}, {pipeline_mode = #tpu.pipeline_mode<synchronous>, transform_indices = @transform_4, window_bounds = array<i64: 1, 32>}, {pipeline_mode = #tpu.pipeline_mode<synchronous>, transform_indices = @transform_5, window_bounds = array<i64: 3, 32, 32>}, {pipeline_mode = #tpu.pipeline_mode<synchronous>, transform_indices = @transform_6, window_bounds = array<i64: 1, 32>}, {pipeline_mode = #tpu.pipeline_mode<synchronous>, transform_indices = @transform_7, window_bounds = array<i64: 1, 32>}, {pipeline_mode = #tpu.pipeline_mode<synchronous>, transform_indices = @transform_8, window_bounds = array<i64: 1, 32>}, {pipeline_mode = #tpu.pipeline_mode<synchronous>, transform_indices = @transform_9, window_bounds = array<i64: 1, 32>}, {pipeline_mode = #tpu.pipeline_mode<synchronous>, transform_indices = @transform_10, window_bounds = array<i64: 1, 1>}, {transform_indices = @transform_11, window_bounds = array<i64: 1, 1, 8>}]} {
    %c0 = arith.constant 0 : index
    %c0_0 = arith.constant 0 : index
    %0 = vector.load %arg1[%c0, %c0_0] : memref<8x32xf32, #tpu.memory_space<vmem>>, vector<8x32xf32>
    %1 = tpu.iota {dimensions = array<i32: 0>} : vector<8x1xi32>
    %c8_i32 = arith.constant 8 : i32
    %c0_i32 = arith.constant 0 : i32
    %2 = arith.cmpi eq, %c8_i32, %c0_i32 : i32
    %c1_i32 = arith.constant 1 : i32
    %3 = arith.select %2, %c1_i32, %c8_i32 : i32
    %4 = vector.broadcast %3 : i32 to vector<8x1xi32>
    %5 = arith.remsi %1, %4 : vector<8x1xi32>
    %c0_i32_1 = arith.constant 0 : i32
    %6 = vector.broadcast %c0_i32_1 : i32 to vector<8x1xi32>
    %7 = arith.cmpi ne, %5, %6 : vector<8x1xi32>
    %c0_i32_2 = arith.constant 0 : i32
    %8 = vector.broadcast %c0_i32_2 : i32 to vector<8x1xi32>
    %9 = arith.cmpi slt, %5, %8 : vector<8x1xi32>
    %c0_i32_3 = arith.constant 0 : i32
    %10 = arith.cmpi slt, %3, %c0_i32_3 : i32
    %11 = vector.broadcast %10 : i1 to vector<8x1xi1>
    %12 = vector.broadcast %11 : vector<8x1xi1> to vector<8x1xi1>
    %13 = arith.xori %9, %12 : vector<8x1xi1>
    %14 = arith.andi %13, %7 : vector<8x1xi1>
    %15 = vector.broadcast %3 : i32 to vector<8x1xi32>
    %16 = arith.addi %5, %15 : vector<8x1xi32>
    %17 = arith.select %14, %16, %5 : vector<8x1xi1>, vector<8x1xi32>
    %c0_i32_4 = arith.constant 0 : i32
    %18 = vector.broadcast %c0_i32_4 : i32 to vector<8x1xi32>
    %19 = arith.cmpi sgt, %17, %18 : vector<8x1xi32>
    %c1_i32_5 = arith.constant 1 : i32
    %20 = tpu.dynamic_rotate %0 by %c1_i32_5 dim 0 : vector<8x32xf32>, i32 -> vector<8x32xf32>
    %cst = arith.constant 0.000000e+00 : f32
    %21 = vector.shape_cast %19 : vector<8x1xi1> to vector<8x1xi1>
    %22 = vector.broadcast %21 : vector<8x1xi1> to vector<8x32xi1>
    %23 = vector.broadcast %cst : f32 to vector<8x32xf32>
    %24 = arith.select %22, %20, %23 : vector<8x32xi1>, vector<8x32xf32>
    %c7_i32 = arith.constant 7 : i32
    %25 = vector.broadcast %c7_i32 : i32 to vector<8x1xi32>
    %26 = arith.cmpi slt, %17, %25 : vector<8x1xi32>
    %c7_i32_6 = arith.constant 7 : i32
    %27 = tpu.dynamic_rotate %0 by %c7_i32_6 dim 0 : vector<8x32xf32>, i32 -> vector<8x32xf32>
    %cst_7 = arith.constant 0.000000e+00 : f32
    %28 = vector.shape_cast %26 : vector<8x1xi1> to vector<8x1xi1>
    %29 = vector.broadcast %28 : vector<8x1xi1> to vector<8x32xi1>
    %30 = vector.broadcast %cst_7 : f32 to vector<8x32xf32>
    %31 = arith.select %29, %27, %30 : vector<8x32xi1>, vector<8x32xf32>
    %32 = arith.truncf %24 : vector<8x32xf32> to vector<8x32xbf16>
    %c0_8 = arith.constant 0 : index
    %c0_9 = arith.constant 0 : index
    %c0_10 = arith.constant 0 : index
    %33 = vector.load %arg2[%c0_8, %c0_9, %c0_10] : memref<3x32x32xbf16, #tpu.memory_space<vmem>>, vector<1x32x32xbf16>
    %34 = vector.shape_cast %33 : vector<1x32x32xbf16> to vector<32x32xbf16>
    %cst_11 = arith.constant dense<0.000000e+00> : vector<8x32xf32>
    %35 = tpu.matmul %32, %34, %cst_11 {dimension_numbers = #tpu.dot_dimension_numbers<[1], [0], [0], [1], [0, 0, 1, 1], [], []>} : vector<8x32xbf16>, vector<32x32xbf16>, vector<8x32xf32> -> vector<8x32xf32>
    %36 = arith.truncf %0 : vector<8x32xf32> to vector<8x32xbf16>
    %c1 = arith.constant 1 : index
    %c0_12 = arith.constant 0 : index
    %c0_13 = arith.constant 0 : index
    %37 = vector.load %arg2[%c1, %c0_12, %c0_13] : memref<3x32x32xbf16, #tpu.memory_space<vmem>>, vector<1x32x32xbf16>
    %38 = vector.shape_cast %37 : vector<1x32x32xbf16> to vector<32x32xbf16>
    %cst_14 = arith.constant dense<0.000000e+00> : vector<8x32xf32>
    %39 = tpu.matmul %36, %38, %cst_14 {dimension_numbers = #tpu.dot_dimension_numbers<[1], [0], [0], [1], [0, 0, 1, 1], [], []>} : vector<8x32xbf16>, vector<32x32xbf16>, vector<8x32xf32> -> vector<8x32xf32>
    %40 = arith.addf %35, %39 : vector<8x32xf32>
    %41 = arith.truncf %31 : vector<8x32xf32> to vector<8x32xbf16>
    %c2 = arith.constant 2 : index
    %c0_15 = arith.constant 0 : index
    %c0_16 = arith.constant 0 : index
    %42 = vector.load %arg2[%c2, %c0_15, %c0_16] : memref<3x32x32xbf16, #tpu.memory_space<vmem>>, vector<1x32x32xbf16>
    %43 = vector.shape_cast %42 : vector<1x32x32xbf16> to vector<32x32xbf16>
    %cst_17 = arith.constant dense<0.000000e+00> : vector<8x32xf32>
    %44 = tpu.matmul %41, %43, %cst_17 {dimension_numbers = #tpu.dot_dimension_numbers<[1], [0], [0], [1], [0, 0, 1, 1], [], []>} : vector<8x32xbf16>, vector<32x32xbf16>, vector<8x32xf32> -> vector<8x32xf32>
    %45 = arith.addf %40, %44 : vector<8x32xf32>
    %c0_18 = arith.constant 0 : index
    %c0_19 = arith.constant 0 : index
    %46 = vector.load %arg3[%c0_18, %c0_19] : memref<1x32xf32, #tpu.memory_space<vmem>>, vector<1x32xf32>
    %47 = vector.broadcast %46 : vector<1x32xf32> to vector<8x32xf32>
    %48 = arith.addf %45, %47 : vector<8x32xf32>
    %cst_20 = arith.constant dense<0.000000e+00> : vector<8xf32>
    %49 = vector.multi_reduction <add>, %48, %cst_20 [1] : vector<8x32xf32> to vector<8xf32>
    %50 = vector.shape_cast %49 : vector<8xf32> to vector<8x1xf32>
    %cst_21 = arith.constant 3.200000e+01 : f32
    %51 = vector.broadcast %cst_21 : f32 to vector<8x1xf32>
    %52 = arith.divf %50, %51 : vector<8x1xf32>
    %53 = vector.broadcast %52 : vector<8x1xf32> to vector<8x32xf32>
    %54 = arith.subf %48, %53 : vector<8x32xf32>
    %55 = arith.mulf %54, %54 : vector<8x32xf32>
    %cst_22 = arith.constant dense<0.000000e+00> : vector<8xf32>
    %56 = vector.multi_reduction <add>, %55, %cst_22 [1] : vector<8x32xf32> to vector<8xf32>
    %57 = vector.shape_cast %56 : vector<8xf32> to vector<8x1xf32>
    %cst_23 = arith.constant 3.200000e+01 : f32
    %58 = vector.broadcast %cst_23 : f32 to vector<8x1xf32>
    %59 = arith.divf %57, %58 : vector<8x1xf32>
    %60 = vector.broadcast %52 : vector<8x1xf32> to vector<8x32xf32>
    %61 = arith.subf %48, %60 : vector<8x32xf32>
    %cst_24 = arith.constant 9.99999974E-6 : f32
    %62 = vector.broadcast %cst_24 : f32 to vector<8x1xf32>
    %63 = arith.addf %59, %62 : vector<8x1xf32>
    %64 = math.rsqrt %63 : vector<8x1xf32>
    %65 = vector.broadcast %64 : vector<8x1xf32> to vector<8x32xf32>
    %66 = arith.mulf %61, %65 : vector<8x32xf32>
    %c0_25 = arith.constant 0 : index
    %c0_26 = arith.constant 0 : index
    %67 = vector.load %arg4[%c0_25, %c0_26] : memref<1x32xf32, #tpu.memory_space<vmem>>, vector<1x32xf32>
    %68 = vector.broadcast %67 : vector<1x32xf32> to vector<8x32xf32>
    %69 = arith.mulf %66, %68 : vector<8x32xf32>
    %c0_27 = arith.constant 0 : index
    %c0_28 = arith.constant 0 : index
    %70 = vector.load %arg5[%c0_27, %c0_28] : memref<1x32xf32, #tpu.memory_space<vmem>>, vector<1x32xf32>
    %71 = vector.broadcast %70 : vector<1x32xf32> to vector<8x32xf32>
    %72 = arith.addf %69, %71 : vector<8x32xf32>
    %cst_29 = arith.constant 0.000000e+00 : f32
    %73 = vector.broadcast %cst_29 : f32 to vector<8x32xf32>
    %74 = arith.maximumf %72, %73 : vector<8x32xf32>
    %c0_i32_30 = arith.constant 0 : i32
    %75 = vector.broadcast %c0_i32_30 : i32 to vector<8x1xi32>
    %76 = arith.cmpi sgt, %17, %75 : vector<8x1xi32>
    %c1_i32_31 = arith.constant 1 : i32
    %77 = tpu.dynamic_rotate %74 by %c1_i32_31 dim 0 : vector<8x32xf32>, i32 -> vector<8x32xf32>
    %cst_32 = arith.constant 0.000000e+00 : f32
    %78 = vector.shape_cast %76 : vector<8x1xi1> to vector<8x1xi1>
    %79 = vector.broadcast %78 : vector<8x1xi1> to vector<8x32xi1>
    %80 = vector.broadcast %cst_32 : f32 to vector<8x32xf32>
    %81 = arith.select %79, %77, %80 : vector<8x32xi1>, vector<8x32xf32>
    %c7_i32_33 = arith.constant 7 : i32
    %82 = vector.broadcast %c7_i32_33 : i32 to vector<8x1xi32>
    %83 = arith.cmpi slt, %17, %82 : vector<8x1xi32>
    %c7_i32_34 = arith.constant 7 : i32
    %84 = tpu.dynamic_rotate %74 by %c7_i32_34 dim 0 : vector<8x32xf32>, i32 -> vector<8x32xf32>
    %cst_35 = arith.constant 0.000000e+00 : f32
    %85 = vector.shape_cast %83 : vector<8x1xi1> to vector<8x1xi1>
    %86 = vector.broadcast %85 : vector<8x1xi1> to vector<8x32xi1>
    %87 = vector.broadcast %cst_35 : f32 to vector<8x32xf32>
    %88 = arith.select %86, %84, %87 : vector<8x32xi1>, vector<8x32xf32>
    %89 = arith.truncf %81 : vector<8x32xf32> to vector<8x32xbf16>
    %c0_36 = arith.constant 0 : index
    %c0_37 = arith.constant 0 : index
    %c0_38 = arith.constant 0 : index
    %90 = vector.load %arg6[%c0_36, %c0_37, %c0_38] : memref<3x32x32xbf16, #tpu.memory_space<vmem>>, vector<1x32x32xbf16>
    %91 = vector.shape_cast %90 : vector<1x32x32xbf16> to vector<32x32xbf16>
    %cst_39 = arith.constant dense<0.000000e+00> : vector<8x32xf32>
    %92 = tpu.matmul %89, %91, %cst_39 {dimension_numbers = #tpu.dot_dimension_numbers<[1], [0], [0], [1], [0, 0, 1, 1], [], []>} : vector<8x32xbf16>, vector<32x32xbf16>, vector<8x32xf32> -> vector<8x32xf32>
    %93 = arith.truncf %74 : vector<8x32xf32> to vector<8x32xbf16>
    %c1_40 = arith.constant 1 : index
    %c0_41 = arith.constant 0 : index
    %c0_42 = arith.constant 0 : index
    %94 = vector.load %arg6[%c1_40, %c0_41, %c0_42] : memref<3x32x32xbf16, #tpu.memory_space<vmem>>, vector<1x32x32xbf16>
    %95 = vector.shape_cast %94 : vector<1x32x32xbf16> to vector<32x32xbf16>
    %cst_43 = arith.constant dense<0.000000e+00> : vector<8x32xf32>
    %96 = tpu.matmul %93, %95, %cst_43 {dimension_numbers = #tpu.dot_dimension_numbers<[1], [0], [0], [1], [0, 0, 1, 1], [], []>} : vector<8x32xbf16>, vector<32x32xbf16>, vector<8x32xf32> -> vector<8x32xf32>
    %97 = arith.addf %92, %96 : vector<8x32xf32>
    %98 = arith.truncf %88 : vector<8x32xf32> to vector<8x32xbf16>
    %c2_44 = arith.constant 2 : index
    %c0_45 = arith.constant 0 : index
    %c0_46 = arith.constant 0 : index
    %99 = vector.load %arg6[%c2_44, %c0_45, %c0_46] : memref<3x32x32xbf16, #tpu.memory_space<vmem>>, vector<1x32x32xbf16>
    %100 = vector.shape_cast %99 : vector<1x32x32xbf16> to vector<32x32xbf16>
    %cst_47 = arith.constant dense<0.000000e+00> : vector<8x32xf32>
    %101 = tpu.matmul %98, %100, %cst_47 {dimension_numbers = #tpu.dot_dimension_numbers<[1], [0], [0], [1], [0, 0, 1, 1], [], []>} : vector<8x32xbf16>, vector<32x32xbf16>, vector<8x32xf32> -> vector<8x32xf32>
    %102 = arith.addf %97, %101 : vector<8x32xf32>
    %c0_48 = arith.constant 0 : index
    %c0_49 = arith.constant 0 : index
    %103 = vector.load %arg7[%c0_48, %c0_49] : memref<1x32xf32, #tpu.memory_space<vmem>>, vector<1x32xf32>
    %104 = vector.broadcast %103 : vector<1x32xf32> to vector<8x32xf32>
    %105 = arith.addf %102, %104 : vector<8x32xf32>
    %cst_50 = arith.constant dense<0.000000e+00> : vector<8xf32>
    %106 = vector.multi_reduction <add>, %105, %cst_50 [1] : vector<8x32xf32> to vector<8xf32>
    %107 = vector.shape_cast %106 : vector<8xf32> to vector<8x1xf32>
    %cst_51 = arith.constant 3.200000e+01 : f32
    %108 = vector.broadcast %cst_51 : f32 to vector<8x1xf32>
    %109 = arith.divf %107, %108 : vector<8x1xf32>
    %110 = vector.broadcast %109 : vector<8x1xf32> to vector<8x32xf32>
    %111 = arith.subf %105, %110 : vector<8x32xf32>
    %112 = arith.mulf %111, %111 : vector<8x32xf32>
    %cst_52 = arith.constant dense<0.000000e+00> : vector<8xf32>
    %113 = vector.multi_reduction <add>, %112, %cst_52 [1] : vector<8x32xf32> to vector<8xf32>
    %114 = vector.shape_cast %113 : vector<8xf32> to vector<8x1xf32>
    %cst_53 = arith.constant 3.200000e+01 : f32
    %115 = vector.broadcast %cst_53 : f32 to vector<8x1xf32>
    %116 = arith.divf %114, %115 : vector<8x1xf32>
    %117 = vector.broadcast %109 : vector<8x1xf32> to vector<8x32xf32>
    %118 = arith.subf %105, %117 : vector<8x32xf32>
    %cst_54 = arith.constant 9.99999974E-6 : f32
    %119 = vector.broadcast %cst_54 : f32 to vector<8x1xf32>
    %120 = arith.addf %116, %119 : vector<8x1xf32>
    %121 = math.rsqrt %120 : vector<8x1xf32>
    %122 = vector.broadcast %121 : vector<8x1xf32> to vector<8x32xf32>
    %123 = arith.mulf %118, %122 : vector<8x32xf32>
    %c0_55 = arith.constant 0 : index
    %c0_56 = arith.constant 0 : index
    %124 = vector.load %arg8[%c0_55, %c0_56] : memref<1x32xf32, #tpu.memory_space<vmem>>, vector<1x32xf32>
    %125 = vector.broadcast %124 : vector<1x32xf32> to vector<8x32xf32>
    %126 = arith.mulf %123, %125 : vector<8x32xf32>
    %c0_57 = arith.constant 0 : index
    %c0_58 = arith.constant 0 : index
    %127 = vector.load %arg9[%c0_57, %c0_58] : memref<1x32xf32, #tpu.memory_space<vmem>>, vector<1x32xf32>
    %128 = vector.broadcast %127 : vector<1x32xf32> to vector<8x32xf32>
    %129 = arith.addf %126, %128 : vector<8x32xf32>
    %cst_59 = arith.constant 0.000000e+00 : f32
    %130 = vector.broadcast %cst_59 : f32 to vector<8x32xf32>
    %131 = arith.maximumf %129, %130 : vector<8x32xf32>
    %c0_60 = arith.constant 0 : index
    %c0_61 = arith.constant 0 : index
    %132 = vector.load %arg10[%c0_60, %c0_61] : memref<1x32xbf16, #tpu.memory_space<vmem>>, vector<1x32xbf16>
    %133 = arith.truncf %131 : vector<8x32xf32> to vector<8x32xbf16>
    %cst_62 = arith.constant dense<0.000000e+00> : vector<1x8xf32>
    %134 = tpu.matmul %132, %133, %cst_62 {dimension_numbers = #tpu.dot_dimension_numbers<[1], [1], [0], [0], [0, 0, 1, 0], [], []>} : vector<1x32xbf16>, vector<8x32xbf16>, vector<1x8xf32> -> vector<1x8xf32>
    %c0_63 = arith.constant 0 : index
    %c0_64 = arith.constant 0 : index
    %135 = vector.load %arg11[%c0_63, %c0_64] : memref<1x1xf32, #tpu.memory_space<vmem>>, vector<1x1xf32>
    %136 = vector.broadcast %135 : vector<1x1xf32> to vector<1x8xf32>
    %137 = arith.addf %134, %136 : vector<1x8xf32>
    %cst_65 = arith.constant 0.000000e+00 : f32
    %138 = vector.broadcast %cst_65 : f32 to vector<1x8xf32>
    %139 = arith.maximumf %137, %138 : vector<1x8xf32>
    %c0_66 = arith.constant 0 : index
    %c0_67 = arith.constant 0 : index
    %c0_68 = arith.constant 0 : index
    %140 = vector.load %arg12[%c0_66, %c0_67, %c0_68] : memref<1x1x8xf32, #tpu.memory_space<vmem>>, vector<1x1x8xf32>
    %141 = vector.shape_cast %140 : vector<1x1x8xf32> to vector<1x8xf32>
    %142 = vector.shape_cast %139 : vector<1x8xf32> to vector<1x1x8xf32>
    tpu.vector_store %arg12[%c0_66, %c0_67, %c0_68], %142 {strides = array<i32>} : memref<1x1x8xf32, #tpu.memory_space<vmem>>, vector<1x1x8xf32>,
    return
  }
  func.func @transform_0(%arg0: i32) -> (i32, i32) {
    %c0_i32 = arith.constant 0 : i32
    %c0_i32_0 = arith.constant 0 : i32
    return %arg0, %c0_i32 : i32, i32
  }
  func.func @transform_1(%arg0: i32) -> (i32, i32, i32) {
    %c0_i32 = arith.constant 0 : i32
    %c0_i32_0 = arith.constant 0 : i32
    %c0_i32_1 = arith.constant 0 : i32
    %c0_i32_2 = arith.constant 0 : i32
    return %c0_i32, %c0_i32_0, %c0_i32_1 : i32, i32, i32
  }
  func.func @transform_2(%arg0: i32) -> (i32, i32) {
    %c0_i32 = arith.constant 0 : i32
    %c0_i32_0 = arith.constant 0 : i32
    %c0_i32_1 = arith.constant 0 : i32
    return %c0_i32, %c0_i32_0 : i32, i32
  }
  func.func @transform_3(%arg0: i32) -> (i32, i32) {
    %c0_i32 = arith.constant 0 : i32
    %c0_i32_0 = arith.constant 0 : i32
    %c0_i32_1 = arith.constant 0 : i32
    return %c0_i32, %c0_i32_0 : i32, i32
  }
  func.func @transform_4(%arg0: i32) -> (i32, i32) {
    %c0_i32 = arith.constant 0 : i32
    %c0_i32_0 = arith.constant 0 : i32
    %c0_i32_1 = arith.constant 0 : i32
    return %c0_i32, %c0_i32_0 : i32, i32
  }
  func.func @transform_5(%arg0: i32) -> (i32, i32, i32) {
    %c0_i32 = arith.constant 0 : i32
    %c0_i32_0 = arith.constant 0 : i32
    %c0_i32_1 = arith.constant 0 : i32
    %c0_i32_2 = arith.constant 0 : i32
    return %c0_i32, %c0_i32_0, %c0_i32_1 : i32, i32, i32
  }
  func.func @transform_6(%arg0: i32) -> (i32, i32) {
    %c0_i32 = arith.constant 0 : i32
    %c0_i32_0 = arith.constant 0 : i32
    %c0_i32_1 = arith.constant 0 : i32
    return %c0_i32, %c0_i32_0 : i32, i32
  }
  func.func @transform_7(%arg0: i32) -> (i32, i32) {
    %c0_i32 = arith.constant 0 : i32
    %c0_i32_0 = arith.constant 0 : i32
    %c0_i32_1 = arith.constant 0 : i32
    return %c0_i32, %c0_i32_0 : i32, i32
  }
  func.func @transform_8(%arg0: i32) -> (i32, i32) {
    %c0_i32 = arith.constant 0 : i32
    %c0_i32_0 = arith.constant 0 : i32
    %c0_i32_1 = arith.constant 0 : i32
    return %c0_i32, %c0_i32_0 : i32, i32
  }
  func.func @transform_9(%arg0: i32) -> (i32, i32) {
    %c0_i32 = arith.constant 0 : i32
    %c0_i32_0 = arith.constant 0 : i32
    %c0_i32_1 = arith.constant 0 : i32
    return %c0_i32, %c0_i32_0 : i32, i32
  }
  func.func @transform_10(%arg0: i32) -> (i32, i32) {
    %c0_i32 = arith.constant 0 : i32
    %c0_i32_0 = arith.constant 0 : i32
    %c0_i32_1 = arith.constant 0 : i32
    return %c0_i32, %c0_i32_0 : i32, i32
  }
  func.func @transform_11(%arg0: i32) -> (i32, i32, i32) {
    %c0_i32 = arith.constant 0 : i32
    %c0_i32_0 = arith.constant 0 : i32
    %c0_i32_1 = arith.constant 0 : i32
    return %arg0, %c0_i32, %c0_i32_0 : i32, i32, i32
  }
}

</mosaic_0001>

<bundles_post_ra>
// kernel: custom-call.4
= control target key start
LH: loop header
LB: loop body
LE: loop exit
PB: predicated region body
PF: predicated region fallthrough
CT: control target
= control target key end

     0   :  { %s6_s0 = inlined_call_operand.vmem [shape: u32[2,16], index: 0, kind: output, shape index: {}]  }

// kernel: ne.4
= control target key start
LH: loop header
LB: loop body
LE: loop exit
PB: predicated region body
PF: predicated region fallthrough
CT: control target
= control target key end

     0   :  { %v15_v2 = vmov 0   ;;  %s40_s0 = inlined_call_operand.vmem [shape: f32[2,16], index: 0, kind: input, shape index: {}, may-alias: {0,1}]   ;;  %s41_s1 = inlined_call_operand.vmem [shape: f32[2,16], index: 1, kind: input, shape index: {}, may-alias: {0,1}]   ;;  %s42_s2 = inlined_call_operand.vmem [shape: pred[2,16], index: 2, kind: output, shape index: {}]  }
   0x1   :  { %v3_v0 = vld [vmem:[%s40_s0] sm:$0x3] }
   0x2   :  { %v4_v1 = vld [vmem:[%s41_s1] sm:$0x3] }
   0x3   :  { %vm7_vm0 = vcmp.ne.f32.partialorder %v3_v0, %v4_v1 }
   0x4   :  { %v8_v3 = vsel %vm7_vm0, 1, %v15_v2 }
   0x5   :  { %v10_v4 = vpack.c.b16 %v15_v2, %v8_v3 }
   0x7   :  { %v11_v5 = vpack.c.b8 %v15_v2, %v10_v4 }
   0x9   :  { %13 = vst [vmem:[%s42_s2] sm:$0x1] %v11_v5 }

// kernel: squeeze.22
= control target key start
LH: loop header
LB: loop body
LE: loop exit
PB: predicated region body
PF: predicated region fallthrough
CT: control target
= control target key end

     0   :  { %vm7_vm0 = vcmask 130048   ;;  %s39_s0 = inlined_call_operand.vmem [shape: f32[32], index: 0, kind: input, shape index: {}]   ;;  %s40_s1 = inlined_call_operand.vmem [shape: f32[2,16], index: 1, kind: output, shape index: {}]  }
   0x1   :  { %v4_v0 = vld [vmem:[%s39_s0] sm:$0x1]  ;;  %s22_s0 = smov 112  }
   0x2   :  { %5 = vst [vmem:[#allocation1] sm:$0x1] %v4_v0 }
   0x9   :  { %v9_v1 = vld [vmem:[#allocation1] sm:$0x1]  }
   0xa   :  { %v6_v2 = vld [vmem:[#allocation1] sm:$0x1]   ;;  %10 = vrot.lane.b32.xlu0 %v9_v1, %s22_s0 }
   0xb   :  { %8 = vst.msk [vmem:[#allocation0] sm:$0x1] %vm7_vm0, %v6_v2  }
  0x7c   :  { %v11_v3 = vpop.permute.xlu0 %10  }
  0x7d   :  { %14 = vst.msk [vmem:[#allocation0 + $0x1] sm:$0x1] %vm7_vm0, %v11_v3  }
  0x84   :  { %v18_v4 = vld [vmem:[#allocation0] sm:$0x3] }
  0x85   :  { %20 = vst [vmem:[%s40_s1] sm:$0x3] %v18_v4 }

// kernel: squeeze.21
= control target key start
LH: loop header
LB: loop body
LE: loop exit
PB: predicated region body
PF: predicated region fallthrough
CT: control target
= control target key end

     0   :  { %vm7_vm0 = vcmask 130048   ;;  %s39_s0 = inlined_call_operand.vmem [shape: s32[32], index: 0, kind: input, shape index: {}]   ;;  %s40_s1 = inlined_call_operand.vmem [shape: s32[2,16], index: 1, kind: output, shape index: {}]  }
   0x1   :  { %v4_v0 = vld [vmem:[%s39_s0] sm:$0x1]  ;;  %s22_s0 = smov 112  }
   0x2   :  { %5 = vst [vmem:[#allocation1] sm:$0x1] %v4_v0 }
   0x9   :  { %v9_v1 = vld [vmem:[#allocation1] sm:$0x1]  }
   0xa   :  { %v6_v2 = vld [vmem:[#allocation1] sm:$0x1]   ;;  %10 = vrot.lane.b32.xlu0 %v9_v1, %s22_s0 }
   0xb   :  { %8 = vst.msk [vmem:[#allocation0] sm:$0x1] %vm7_vm0, %v6_v2  }
  0x7c   :  { %v11_v3 = vpop.permute.xlu0 %10  }
  0x7d   :  { %14 = vst.msk [vmem:[#allocation0 + $0x1] sm:$0x1] %vm7_vm0, %v11_v3  }
  0x84   :  { %v18_v4 = vld [vmem:[#allocation0] sm:$0x3] }
  0x85   :  { %20 = vst [vmem:[%s40_s1] sm:$0x3] %v18_v4 }

// kernel: variance_adaptor_forward.2
= control target key start
LH: loop header
LB: loop body
LE: loop exit
PB: predicated region body
PF: predicated region fallthrough
CT: control target
= control target key end

     0   :  { %s1515_s0 = inlined_call_operand.vmem [shape: f32[16,32], index: 0, kind: input, shape index: {}]   ;;  %s1516_s1 = inlined_call_operand.vmem [shape: bf16[3,32,32], index: 1, kind: input, shape index: {}]   ;;  %s1517_s2 = inlined_call_operand.vmem [shape: f32[1,32], index: 2, kind: input, shape index: {}]   ;;  %s1518_s3 = inlined_call_operand.vmem [shape: f32[1,32], index: 3, kind: input, shape index: {}]   ;;  %s1519_s4 = inlined_call_operand.vmem [shape: f32[1,32], index: 4, kind: input, shape index: {}]   ;;  %s1520_s5 = inlined_call_operand.vmem [shape: bf16[3,32,32], index: 5, kind: input, shape index: {}]   ;;  %s1521_s6 = inlined_call_operand.vmem [shape: f32[1,32], index: 6, kind: input, shape index: {}]   ;;  %s1522_s7 = inlined_call_operand.vmem [shape: f32[1,32], index: 7, kind: input, shape index: {}]   ;;  %s1523_s8 = inlined_call_operand.vmem [shape: f32[1,32], index: 8, kind: input, shape index: {}]   ;;  %s1524_s9 = inlined_call_operand.vmem [shape: bf16[1,32], index: 9, kind: input, shape index: {}]   ;;  %s1525_s10 = inlined_call_operand.<no memory space> [shape: f32[1,1], index: 10, kind: input, shape index: {}]   ;;  %s1526_s11 = inlined_call_operand.hbm [shape: f32[2,1,8], index: 11, kind: output, shape index: {}]  }
   0x1   :  { %v16_v0 = vstv %s1525_s10 }
   0x2   :  { %17 = vst [vmem:[#allocation2] sm:$0x1] %v16_v0 }
   0x3   :  { %18 = vsyncpa [#allocation4], 0 }
   0x4   :  { %20 = vsyncpa [#allocation4 + $0x1], 0  ;;  %s1299_s19 = smov 0   ;;  %s1301_s20 = smov 0  }
   0x5   :  { %s1303_s21 = smov 0   ;;  %s1305_s22 = smov 0  }
   0x6 LB: > { %s1320_s10 = sadd.s32 4294967295, %s1230_s22   ;;  %s986_s23 = sadd.s32 4294967294, %s1230_s22   ;;  %s1230_s22 = sphi %s1305_s22, %s1536_s22   ;;  %s1226_s21 = sphi %s1303_s21, %s1535_s21   ;;  %s1222_s20 = sphi %s1301_s20, %s1534_s20   ;;  %s1218_s19 = sphi %s1299_s19, %s1533_s19  }
   0x7   : > { %s1324_s24 = sadd.s32 1, %s1230_s22   ;;  %s269_s25 = sadd.s32 1, %s1226_s21 }
   0x8   : > { %s266_s26 = ssub.s32 %s1230_s22, %s1324_s24  ;;  %p279_p0 = scmp.ne.s32.totalorder %s1226_s21, %s1222_s20 }
   0x9   : > { %p267_p1 = scmp.eq.s32.totalorder %s266_s26, 0  ;;  %p280_p2 = scmp.eq.s32.totalorder %s1320_s10, 1 }
   0xa   : > { %p285_p3 = scmp.ne.s32.totalorder %s1222_s20, %s1218_s19  ;;  %p286_p4 = scmp.eq.s32.totalorder %s986_s23, 1 }
   0xb   : > { %s1335_s27 = scalar_select %p267_p1, %s1226_s21, %s269_s25  }
   0xc   : > { %p1337_p5 = por %p280_p2, %p279_p0  ;;  %p1341_p6 = por %p286_p4, %p285_p3 }
   0xd   : > { %p989_p7 = scmp.ge.s32.totalorder %s1230_s22, 1  ;;  %p341_p8 = scmp.lt.s32.totalorder %s1230_s22, 3 }
   0xf   : > { %p342_p9 = pnand %p989_p7, %p341_p8 }
  0x10   : > { %v1152_v1 = vld [vmem:[%s1516_s1 + $0x10] sm:$0xff] (!%p342_p9)   ;;  %v1232_v2 = vmov (!%p342_p9), 0.0   ;;  %v1153_v3 = vld [vmem:[%s1516_s1] sm:$0xff] (!%p342_p9)   ;;  %v385_v4 = vlaneseq (!%p342_p9)  ;;  %v1154_v5 = vld [vmem:[%s1516_s1 + $0x18] sm:$0xff] (!%p342_p9)   ;;  %vm1233_vm0 = vmmov (!%p342_p9), 0   ;;  %p379_p10 = scmp.lt.s32.totalorder (!%p342_p9), %s1320_s10, 1 }
  0x11   : > { %345 = sbr.rel (%p342_p9) target bundleno = 1351 (0x547), region = 64  ;;  %1055 = vmatprep.subr.bf16.mxu0 (!%p342_p9), %v1232_v2  ;;  %1063 = vmatprep.subr.bf16.mxu1 (!%p342_p9), %v1232_v2  ;;  %v1155_v6 = vld [vmem:[%s1516_s1 + $0x8] sm:$0xff] (!%p342_p9)   ;;  %v1156_v8 = vld [vmem:[%s1516_s1 + $0x20] sm:$0xff] (!%p342_p9)   ;;  %vm432_vm1 = vcmask (!%p342_p9), 261120   ;;  %v1158_v43 = vld [vmem:[%s1520_s5 + $0x10] sm:$0xff] (!%p342_p9)   ;;  %s377_s26 = sand.u32 (!%p342_p9), 1, %s1222_s20  }
  0x12   : > { %1056 = vmatpush3.bf16.msra.mxu0 (!%p342_p9), %v1152_v1  ;;  %1059 = vmatprep.mubr.msk.bf16.mxu0 (!%p342_p9), %vm1233_vm0, %v1232_v2  ;;  %v1369_v7 = vshrl.u32 (!%p342_p9), %v385_v4, 7  ;;  %v1157_v18 = vld [vmem:[%s1516_s1 + $0x28] sm:$0xff] (!%p342_p9)   ;;  %v1008_v31 = vld [vmem:[%s1517_s2] ss:$0 sm:$0xff] (!%p342_p9)  ;;  %v1160_v45 = vld [vmem:[%s1520_s5 + $0x18] sm:$0xff] (!%p342_p9)   ;;  %s1032_s30 = sshll.u32 (!%p342_p9), %s1320_s10, 4 }
  0x13   : > { %1064 = vmatpush3.bf16.msra.mxu1 (!%p342_p9), %v1153_v3  ;;  %1057 = vmatprep.subr.bf16.mxu0 (!%p342_p9), %v1232_v2  ;;  %v1159_v44 = vld [vmem:[%s1520_s5] sm:$0xff] (!%p342_p9)   ;;  %v1161_v46 = vld [vmem:[%s1520_s5 + $0x8] sm:$0xff] (!%p342_p9)   ;;  %vm916_vm4 = vcmask (!%p342_p9), 57344   ;;  %s1473_s16 = scalar_lea.hbm (!%p342_p9), %s1526_s11, %s1032_s30  ;;  %s1235_s18 = smov (!%p342_p9), [#allocation3]  }
  0x14   : > { %1065 = vmatprep.subr.bf16.mxu1 (!%p342_p9), %v1232_v2  ;;  %1067 = vmatprep.mubr.msk.bf16.mxu1 (!%p342_p9), %vm1233_vm0, %v1232_v2  ;;  %v391_v9 = vand.u32 (!%p342_p9), 7, %v1369_v7  ;;  %v1009_v51 = vld [vmem:[%s1518_s3] ss:$0 sm:$0xff] (!%p342_p9)  ;;  %v1163_v63 = vld [vmem:[%s1520_s5 + $0x28] sm:$0xff] (!%p342_p9)  }
  0x15   : > { %v1010_v53 = vld [vmem:[%s1519_s4] ss:$0 sm:$0xff] (!%p342_p9) }
  0x16   : > { %1058 = vmatpush3.bf16.msra.mxu0 (!%p342_p9), %v1154_v5  ;;  %vm1380_vm2 = vcmp.gt.s32.totalorder (!%p342_p9), %v391_v9, 0  ;;  %vm1384_vm3 = vcmp.lt.s32.totalorder (!%p342_p9), %v391_v9, 7  ;;  %v1162_v57 = vld [vmem:[%s1520_s5 + $0x20] sm:$0xff] (!%p342_p9)  }
  0x17   : > { %1066 = vmatpush3.bf16.msra.mxu1 (!%p342_p9), %v1155_v6  ;;  %1071 = vmatprep.subr.bf16.mxu0 (!%p342_p9), %v1232_v2 }
  0x18   : > { %s380_s23 = scalar_select %p379_p10, %s1320_s10, 1  ;;  %1079 = vmatprep.subr.bf16.mxu1 %v1232_v2 }
  0x19   : > { %s919_s10 = scalar_lea.sflag [#allocation4], %s377_s26 }
  0x1a   : > { %s990_s25 = sshll.u32 %s380_s23, 3  ;;  %s1172_s23 = sshll.u32 %s1235_s18, 4  ;;  %s1173_s23 = int_to_ptr.vmem [resolvable:$false] %s1172_s23 }
  0x1b   : > { %s382_s12 = scalar_lea.vmem %s1515_s0, %s990_s25  ;;  %s1174_s25 = scalar_lea.vmem %s1173_s23, 32 }
  0x1c   : > { %v384_v10 = vld [vmem:[%s382_s12] sm:$0xff]  ;;  %s378_s12 = scalar_lea.vmem [#allocation3], %s377_s26 }
  0x1d   : > { %v405_v11 = vrot.slane %v384_v10, 1  ;;  %v414_v12 = vpack.c.bf16 %v384_v10, %v384_v10  ;;  %v400_v14 = vrot.slane %v384_v10, 7  ;;  %s931_s13 = sshll.u32 %s378_s12, 4  ;;  %s1475_s13 = int_to_ptr.vmem [resolvable:$true] %s931_s13 }
  0x1e   : > { %s1168_s17 = scalar_lea.vmem %s1475_s13, 16  ;;  %p1175_p0 = scmp.lt.s32.totalorder %s1475_s13, %s1173_s23 }
  0x1f   : > { %1060 = vmatmul.mubr.msk.bf16.vlgmr.msra.gmra.mrb[0].mxu0 %vm432_vm1, %v414_v12  ;;  %v403_v16 = vsel %vm1380_vm2, %v400_v14, 0.0  ;;  %v408_v19 = vsel %vm1384_vm3, %v405_v11, 0.0  ;;  %v1028_v14 = vld [vmem:[%s1521_s6] ss:$0 sm:$0xff]  ;;  %p1169_p11 = scmp.ne.s32.totalorder %s1475_s13, %s1168_s17  ;;  %p1176_p1 = scmp.lt.s32.totalorder %s1174_s25, %s1168_s17 }
  0x20   : > { %1072 = vmatpush3.bf16.msra.mxu0 %v1156_v8  ;;  %v409_v17 = vpack.c.bf16 %v403_v16, %v403_v16  ;;  %1075 = vmatprep.mubr.msk.bf16.mxu0 %vm1233_vm0, %v1232_v2  ;;  %v531_v20 = vpack.c.bf16 %v408_v19, %v408_v19 }
  0x21   : > { %1073 = vmatprep.subr.bf16.mxu0 %v1232_v2  ;;  %p1170_p12 = pnand %p1169_p11, %p1337_p5  ;;  %p1177_p2 = por %p1176_p1, %p1175_p0 }
  0x22   : > { %1068 = vmatmul.mubr.msk.bf16.vlgmr.msra.gmra.mrb[0].mxu1 %vm432_vm1, %v409_v17 }
  0x23   : > { %1083 = vmatprep.mubr.msk.bf16.mxu1 %vm1233_vm0, %v1232_v2  ;;  %1080 = vmatpush3.bf16.msra.mxu1 %v1158_v43  ;;  %p1171_p13 = pneg %p1170_p12 }
  0x24   : > { %1074 = vmatpush3.bf16.msra.mxu0 %v1157_v18  ;;  %1081 = vmatprep.subr.bf16.mxu1 %v1232_v2 }
  0x25   : > { %1087 = vmatprep.subr.bf16.mxu0 %v1232_v2  ;;  %p1178_p3 = pnand %p1177_p2, %p1171_p13 }
  0x27   : > { %1076 = vmatmul.mubr.msk.bf16.vlgmr.msra.gmra.mrb[4].mxu0 %vm432_vm1, %v531_v20  ;;  %1082 = vmatpush3.bf16.msra.mxu1 %v1160_v45 }
  0x28   : > { %1091 = vmatprep.mubr.msk.bf16.mxu0 %vm1233_vm0, %v1232_v2  ;;  %1088 = vmatpush3.bf16.msra.mxu0 %v1159_v44 }
  0x29   : > { %1089 = vmatprep.subr.bf16.mxu0 %v1232_v2  ;;  %1095 = vmatprep.subr.bf16.mxu1 %v1232_v2 }
  0x2c   : > { %1090 = vmatpush3.bf16.msra.mxu0 %v1161_v46 }
  0x2d   : > { %1103 = vmatprep.subr.bf16.mxu0 %v1232_v2 }
  0xf2   : > { %v470_v21 = vpop.f32.mrb[0].mxu0 }
  0xf3   : > { %v1061_v22 = vpop.f32.mrb[1].mxu0 }
  0xf4   : > { %v473_v23 = vpop.f32.mrb[2].mxu0 }
  0xf5   : > { %v525_v24 = vpop.f32.mrb[0].mxu1  ;;  %v1062_v25 = vpop.f32.mrb[3].mxu0 }
  0xf6   : > { %v526_v26 = vadd.f32 %v525_v24, %v470_v21  ;;  %v1069_v27 = vpop.f32.mrb[1].mxu1  ;;  %v859_v25 = vld [vmem:[#allocation2] sm:$0x1] }
  0xf7   : > { %v528_v28 = vpop.f32.mrb[2].mxu1 }
  0xf8   : > { %v1070_v29 = vpop.f32.mrb[3].mxu1 }
  0xfa   : > { %v586_v30 = vpop.f32.mrb[4].mxu0 }
  0xfb   : > { %v592_v32 = vadd.f32 %v586_v30, %v526_v26  ;;  %v1077_v33 = vpop.f32.mrb[5].mxu0  ;;  %v1234_v26 = vmov 0  }
  0xfc   : > { %v589_v34 = vpop.f32.mrb[6].mxu0  ;;  %1151 = vset.pattern.permute.xlu0 %v1234_v26  ;;  %v1030_v33 = vld [vmem:[%s1523_s8] ss:$0 sm:$0xff] }
  0xfd   : > { %v1078_v35 = vpop.f32.mrb[7].mxu0  ;;  %v600_v36 = vadd.f32 %v1008_v31, %v592_v32  ;;  %v1029_v31 = vld [vmem:[%s1522_s7] ss:$0 sm:$0xff] }
  0xff   : > { %v601_v37 = vsel %vm432_vm1, %v600_v36, 0.0 }
 0x100   : > { %602 = vadd.xlane.f32.xlu0 %v601_v37 }
 0x18d   : > { %v603_v38 = vpop.xlane.xlu0 %602 }
 0x18e   : > { %v605_v39 = vmul.f32 0.03125, %v603_v38 }
 0x190   : > { %v606_v40 = vsub.f32 %v600_v36, %v605_v39  ;;  %v857_v39 = vld [vmem:[%s1524_s9] sm:$0x1] }
 0x192   : > { %v607_v41 = vmul.f32 %v606_v40, %v606_v40 }
 0x194   : > { %v608_v42 = vsel %vm432_vm1, %v607_v41, 0.0 }
 0x195   : > { %609 = vadd.xlane.f32.xlu0 %v608_v42 }
 0x1ab   : > { %862 = vperm.xlu0 %1151, %v859_v25  }
 0x222   : > { %v610_v47 = vpop.xlane.xlu0 %609 }
 0x223   : > { %v611_v48 = vmul.f32 0.03125, %v610_v47 }
 0x225   : > { %v612_v49 = vadd.f32 1e-05, %v611_v48 }
 0x227   : > { %1164 = vrsqrt.f32 %v612_v49 }
 0x22a   : > { %v863_v41 = vpop.permute.xlu0 %862 }
 0x231   : > { %v1165_v50 = vpop.eup %1164 }
 0x232   : > { %v614_v52 = vmul.f32 %v1165_v50, %v606_v40  ;;  %v867_v40 = vsub.s32 0, %v1369_v7 }
 0x234   : > { %v622_v54 = vmul.f32 %v1009_v51, %v614_v52  ;;  %v868_v42 = vrot.slane %v863_v41, %v867_v40 }
 0x236   : > { %v630_v55 = vadd.f32 %v1010_v53, %v622_v54 }
 0x238   : > { %v631_v56 = vmax.f32 %v630_v55, 0.0 }
 0x23a   : > { %v641_v58 = vpack.c.bf16 %v631_v56, %v631_v56  ;;  %v632_v59 = vrot.slane %v631_v56, 7  ;;  %v634_v60 = vrot.slane %v631_v56, 1 }
 0x23c   : > { %1084 = vmatmul.mubr.msk.bf16.vlgmr.msra.gmra.mrb[4].mxu1 %vm432_vm1, %v641_v58  ;;  %v633_v61 = vsel %vm1380_vm2, %v632_v59, 0.0  ;;  %v635_v0 = vsel %vm1384_vm3, %v634_v60, 0.0 }
 0x23d   : > { %1096 = vmatpush3.bf16.msra.mxu1 %v1162_v57  ;;  %v636_v62 = vpack.c.bf16 %v633_v61, %v633_v61  ;;  %1099 = vmatprep.mubr.msk.bf16.mxu1 %vm1233_vm0, %v1232_v2  ;;  %v757_v1 = vpack.c.bf16 %v635_v0, %v635_v0 }
 0x23e   : > { %1097 = vmatprep.subr.bf16.mxu1 %v1232_v2 }
 0x23f   : > { %1092 = vmatmul.mubr.msk.bf16.vlgmr.msra.gmra.mrb[8].mxu0 %vm432_vm1, %v636_v62 }
 0x240   : > { %1105 = vmatprep.mubr.msk.bf16.mxu0 %vm1233_vm0, %v1232_v2 }
 0x241   : > { %1098 = vmatpush3.bf16.msra.mxu1 %v1163_v63 }
 0x244   : > { %1100 = vmatmul.mubr.msk.bf16.vlgmr.msra.gmra.mrb[8].mxu1 %vm432_vm1, %v757_v1 }
 0x30f   : > { %v696_v3 = vpop.f32.mrb[4].mxu1 }
 0x310   : > { %v1085_v4 = vpop.f32.mrb[5].mxu1 }
 0x311   : > { %v699_v5 = vpop.f32.mrb[6].mxu1 }
 0x312   : > { %v1086_v6 = vpop.f32.mrb[7].mxu1  ;;  %v751_v8 = vpop.f32.mrb[8].mxu0 }
 0x313   : > { %v752_v9 = vadd.f32 %v751_v8, %v696_v3  ;;  %v1093_v10 = vpop.f32.mrb[9].mxu0 }
 0x314   : > { %v754_v11 = vpop.f32.mrb[10].mxu0 }
 0x315   : > { %v1094_v12 = vpop.f32.mrb[11].mxu0 }
 0x317   : > { %v812_v13 = vpop.f32.mrb[8].mxu1 }
 0x318   : > { %v818_v15 = vadd.f32 %v812_v13, %v752_v9  ;;  %v1101_v2 = vpop.f32.mrb[9].mxu1 }
 0x319   : > { %v815_v16 = vpop.f32.mrb[10].mxu1 }
 0x31a   : > { %v1102_v17 = vpop.f32.mrb[11].mxu1  ;;  %v826_v18 = vadd.f32 %v1028_v14, %v818_v15 }
 0x31c   : > { %v827_v19 = vsel %vm432_vm1, %v826_v18, 0.0 }
 0x31d   : > { %828 = vadd.xlane.f32.xlu1 %v827_v19 }
 0x3aa   : > { %v829_v20 = vpop.xlane.xlu1 %828 }
 0x3ab   : > { %v830_v21 = vmul.f32 0.03125, %v829_v20 }
 0x3ad   : > { %v831_v22 = vsub.f32 %v826_v18, %v830_v21 }
 0x3af   : > { %v832_v23 = vmul.f32 %v831_v22, %v831_v22 }
 0x3b1   : > { %v833_v24 = vsel %vm432_vm1, %v832_v23, 0.0 }
 0x3b2   : > { %834 = vadd.xlane.f32.xlu1 %v833_v24 }
 0x43f   : > { %v835_v27 = vpop.xlane.xlu1 %834 }
 0x440   : > { %v836_v28 = vmul.f32 0.03125, %v835_v27 }
 0x442   : > { %v837_v29 = vadd.f32 1e-05, %v836_v28 }
 0x444   : > { %1166 = vrsqrt.f32 %v837_v29 }
 0x44e   : > { %v1167_v30 = vpop.eup %1166 }
 0x44f   : > { %v839_v32 = vmul.f32 %v1167_v30, %v831_v22 }
 0x451   : > { %v847_v34 = vmul.f32 %v1029_v31, %v839_v32 }
 0x453   : > { %v855_v35 = vadd.f32 %v1030_v33, %v847_v34 }
 0x455   : > { %v856_v36 = vmax.f32 %v855_v35, 0.0 }
 0x457   : > { %v858_v37 = vpack.c.bf16 %v856_v36, %v856_v36 }
 0x459   : > { %v873_v38 = vsel %vm432_vm1, %v858_v37, 0 }
 0x45a   : > { %1104 = vmatpush3.bf16.xpose.msra.mxu0 %v873_v38 }
 0x461   : > { %1106 = vmatmul.mubr.msk.bf16.vlgmr.msra.gmra.mrb[12].mxu0 %vm432_vm1, %v857_v39 }
 0x534   : > { %v909_v43 = vpop.f32.mrb[12].mxu0 }
 0x535   : > { %v910_v44 = vadd.f32 %v909_v43, %v868_v42  ;;  %v1107_v45 = vpop.f32.mrb[13].mxu0 }
 0x536   : > { %v912_v46 = vpop.f32.mrb[14].mxu0 }
 0x537   : > { %v915_v47 = vmax.f32 %v910_v44, 0.0  ;;  %v1108_v48 = vpop.f32.mrb[15].mxu0 }
 0x539   : > { %917 = vst.msk [vmem:[%s378_s12] sm:$0x1] %vm916_vm4, %v915_v47 }
 0x53a   : > { %1181 = shalt.err (!%p1178_p3)
}
 0x53b   : > { %s1182_s26 = scalar_lea.hbm %s1473_s16, 16  ;;  %s1186_s14 = scalar_lea.hbm %s1526_s11, 32 }
 0x53c   : > { %p1183_p4 = scmp.ne.s32.totalorder %s1473_s16, %s1182_s26  ;;  %p1187_p9 = scmp.lt.u32.totalorder %s1473_s16, %s1526_s11 }
 0x53d   : > { %p1188_p10 = scmp.lt.u32.totalorder %s1186_s14, %s1182_s26  ;;  %p1190_p12 = scmp.lt.u32.totalorder %s1182_s26, %s1473_s16 }
 0x53e   : > { %p1184_p7 = pnand %p1183_p4, %p1337_p5 }
 0x53f   : > { %p1189_p11 = por %p1188_p10, %p1187_p9 }
 0x540   : > { %p1185_p8 = pneg %p1184_p7 }
 0x541   : > { %p1191_p13 = por %p1190_p12, %p1189_p11 }
 0x543   : > { %p1192_p0 = pnand %p1191_p13, %p1185_p8 }
 0x545   : > { %1195 = shalt.err (!%p1192_p0)
}
 0x546   : > { %1109 = dma.vmem_to_hbm [thread:$0]  (%p1337_p5), %s1475_s13, 16, %s1473_s16, %s919_s10  }
 0x547 PF: > { %p1115_p1 = scmp.ge.s32.totalorder %s1230_s22, 2  ;;  %s943_s17 = sand.u32 1, %s1218_s19  }
 0x548   : > { %s944_s23 = scalar_lea.sflag [#allocation4], %s943_s17 }
 0x549   : > { %p1112_p2 = pnand %p1115_p1, %p1341_p6 }
 0x54b   : > { %1213 = dma.done.wait (!%p1112_p2), %s944_s23, 16  }
 0x54c   : > { %1215 = vsyncadd (!%p1112_p2), %s944_s23, 4294967280  ;;  %p23_p3 = scmp.ge.s32.totalorder %s1324_s24, 4   ;;  %s1533_s19 = smov %s1222_s20 }
 0x54d   : > { %s1534_s20 = smov %s1226_s21  ;;  %s1535_s21 = smov %s1335_s27 }
 0x54e   : > { %s1536_s22 = smov %s1324_s24  ;;  %25 = sbr.rel (!%p23_p3) target bundleno = 6 (0x6), region = 103 }
 0x555   :  { %948 = vsyncpa [#allocation4], 1 }
 0x556   :  { %950 = vsyncpa [#allocation4 + $0x1], 1 }

// kernel: variance_adaptor_forward.3
= control target key start
LH: loop header
LB: loop body
LE: loop exit
PB: predicated region body
PF: predicated region fallthrough
CT: control target
= control target key end

     0   :  { %s2317_s0 = inlined_call_operand.vmem [shape: s32[2,16,3], index: 0, kind: input, shape index: {}]   ;;  %s2318_s1 = inlined_call_operand.vmem [shape: f32[2,8,32], index: 1, kind: input, shape index: {}]   ;;  %s2319_s2 = inlined_call_operand.vmem [shape: bf16[32,32], index: 2, kind: input, shape index: {}]   ;;  %s2320_s3 = inlined_call_operand.vmem [shape: bf16[3,32,64], index: 3, kind: input, shape index: {}]   ;;  %s2321_s4 = inlined_call_operand.vmem [shape: f32[1,64], index: 4, kind: input, shape index: {}]   ;;  %s2322_s5 = inlined_call_operand.vmem [shape: f32[1,64], index: 5, kind: input, shape index: {}]   ;;  %s2323_s6 = inlined_call_operand.vmem [shape: f32[1,64], index: 6, kind: input, shape index: {}]   ;;  %s2324_s7 = inlined_call_operand.vmem [shape: bf16[3,64,64], index: 7, kind: input, shape index: {}]   ;;  %s2325_s8 = inlined_call_operand.vmem [shape: f32[1,64], index: 8, kind: input, shape index: {}]   ;;  %s2326_s9 = inlined_call_operand.vmem [shape: f32[1,64], index: 9, kind: input, shape index: {}]   ;;  %s2327_s10 = inlined_call_operand.vmem [shape: f32[1,64], index: 10, kind: input, shape index: {}]   ;;  %s2328_s11 = inlined_call_operand.vmem [shape: bf16[2,64], index: 11, kind: input, shape index: {}]   ;;  %s2329_s12 = inlined_call_operand.vmem [shape: f32[2,1], index: 12, kind: input, shape index: {}]   ;;  %s2330_s13 = inlined_call_operand.hbm [shape: f32[2,16,32], index: 13, kind: output, shape index: {0}]   ;;  %s2331_s14 = inlined_call_operand.vmem [shape: f32[2,2,16], index: 14, kind: output, shape index: {1}]  }
   0x1   :  { %2333 = sst [smem:[#allocation7_spill]] %s2317_s0 }
   0x2   :  { %2334 = sst [smem:[#allocation8_spill]] %s2318_s1 }
   0x3   :  { %20 = vsyncpa [#allocation3], 0 }
   0x4   :  { %22 = vsyncpa [#allocation3 + $0x1], 0  ;;  %s1925_s29 = smov 0   ;;  %s1927_s30 = smov 0  }
   0x5   :  { %s1929_s15 = smov 0   ;;  %s1931_s16 = smov 0  }
   0x6 LB: > { %2335 = sst [smem:[#allocation5_spill]] %s1836_s15  ;;  %s1946_s17 = sadd.s32 4294967295, %s1840_s16   ;;  %s1840_s16 = sphi %s1931_s16, %s2345_s16   ;;  %s1836_s15 = sphi %s1929_s15, %s2342_s15   ;;  %s1832_s30 = sphi %s1927_s30, %s2344_s30   ;;  %s1828_s29 = sphi %s1925_s29, %s2343_s29  }
   0x7   : > { %s1507_s18 = sadd.s32 4294967294, %s1840_s16   ;;  %s1950_s19 = sadd.s32 1, %s1840_s16  }
   0x8   : > { %s318_s20 = sadd.s32 1, %s1836_s15  ;;  %s315_s21 = ssub.s32 %s1840_s16, %s1950_s19 }
   0x9   : > { %p328_p0 = scmp.ne.s32.totalorder %s1836_s15, %s1832_s30  ;;  %p316_p1 = scmp.eq.s32.totalorder %s315_s21, 0 }
   0xa   : > { %p329_p2 = scmp.eq.s32.totalorder %s1946_s17, 1  ;;  %p334_p3 = scmp.ne.s32.totalorder %s1832_s30, %s1828_s29 }
   0xb   : > { %p335_p4 = scmp.eq.s32.totalorder %s1507_s18, 1  ;;  %p1510_p7 = scmp.ge.s32.totalorder %s1840_s16, 1 }
   0xc   : > { %s1961_s22 = scalar_select %p316_p1, %s1836_s15, %s318_s20  }
   0xd   : > { %p1963_p5 = por %p329_p2, %p328_p0  ;;  %p1967_p6 = por %p335_p4, %p334_p3 }
   0xe   : > { %2336 = sst [smem:[#allocation6_spill]] %s1961_s22  ;;  %p427_p8 = scmp.lt.s32.totalorder %s1840_s16, 3 }
  0x10   : > { %p428_p9 = pnand %p1510_p7, %p427_p8 }
  0x11   : > { %p481_p10 = scmp.lt.s32.totalorder (!%p428_p9), %s1946_s17, 1  ;;  %v1842_v0 = vmov (!%p428_p9), 0   ;;  %s2339_s0 = sld [smem:[#allocation7_spill]] (!%p428_p9)  ;;  %v1843_v3 = vmov (!%p428_p9), 0.0   ;;  %v1750_v5 = vld [vmem:[%s2320_s3 + $0x10] sm:$0xff] (!%p428_p9)   ;;  %v498_v6 = vlaneseq (!%p428_p9)  ;;  %vm512_vm0 = vcmask (!%p428_p9), 64512  }
  0x12   : > { %431 = sbr.rel (%p428_p9) target bundleno = 1468 (0x5bc), region = 72  ;;  %1744 = vset.pattern.permute.xlu0 (!%p428_p9), %v1842_v0  ;;  %1624 = vmatprep.subr.bf16.mxu1 (!%p428_p9), %v1843_v3  ;;  %s2340_s1 = sld [smem:[#allocation8_spill]] (!%p428_p9)  ;;  %v1751_v12 = vld [vmem:[%s2320_s3 + $0x18] sm:$0xff] (!%p428_p9)   ;;  %v1752_v13 = vld [vmem:[%s2320_s3] sm:$0xff] (!%p428_p9)   ;;  %vm1844_vm3 = vmmov (!%p428_p9), 0   ;;  %v1753_v14 = vld [vmem:[%s2320_s3 + $0x8] sm:$0xff] (!%p428_p9)  }
  0x13   : > { %1625 = vmatpush3.bf16.msra.mxu1 (!%p428_p9), %v1750_v5  ;;  %v1998_v7 = vand.u32 (!%p428_p9), 127, %v498_v6  ;;  %1628 = vmatprep.mubr.msk.bf16.mxu1 (!%p428_p9), %vm1844_vm3, %v1843_v3  ;;  %v2020_v15 = vshrl.u32 (!%p428_p9), %v498_v6, 7  ;;  %vm647_vm7 = vcmask (!%p428_p9), 261120   ;;  %v1754_v21 = vld [vmem:[%s2320_s3 + $0x20] sm:$0xff] (!%p428_p9)   ;;  %v1755_v31 = vld [vmem:[%s2320_s3 + $0x28] sm:$0xff] (!%p428_p9)   ;;  %vm823_vm10 = vcmask (!%p428_p9), 523264  }
  0x14   : > { %1626 = vmatprep.subr.bf16.mxu1 (!%p428_p9), %v1843_v3  ;;  %v1537_v45 = vld [vmem:[%s2321_s4] ss:$0 sm:$0xff] (!%p428_p9)  ;;  %s1847_s28 = smov (!%p428_p9), [#allocation2]  }
  0x15   : > { %v2023_v16 = vadd.s32 (!%p428_p9), 8, %v2020_v15  ;;  %vm598_vm4 = vcmp.gt.s32.totalorder (!%p428_p9), %v2020_v15, 0  ;;  %vm602_vm5 = vcmp.lt.s32.totalorder (!%p428_p9), %v2020_v15, 1  ;;  %vm615_vm6 = vcmp.lt.s32.totalorder (!%p428_p9), %v2020_v15, 7 }
  0x16   : > { %vm597_vm9 = vcmp.lt.s32.totalorder (!%p428_p9), %v1998_v7, 32 }
  0x17   : > { %1627 = vmatpush3.bf16.msra.mxu1 (!%p428_p9), %v1751_v12  ;;  %vm612_vm8 = vcmp.lt.s32.totalorder (!%p428_p9), %v2023_v16, 15  ;;  %v1760_v12 = vld [vmem:[%s2324_s7 + $0x8] sm:$0xff] (!%p428_p9)   ;;  %v1571_v16 = vld [vmem:[%s2325_s8] ss:$0 sm:$0xff] (!%p428_p9) }
  0x18   : > { %1640 = vmatprep.subr.bf16.mxu1 (!%p428_p9), %v1843_v3 }
  0x19   : > { %s1976_s25 = scalar_select %p481_p10, %s1946_s17, 1 }
  0x1b   : > { %s1585_s26 = sshll.u32 %s1976_s25, 4  ;;  %s1514_s20 = sshll.u32 %s1976_s25, 3 }
  0x1c   : > { %s485_s18 = scalar_lea.vmem %s2339_s0, %s1585_s26  ;;  %s489_s15 = scalar_lea.vmem %s2340_s1, %s1514_s20 }
  0x1d   : > { %v1982_v1 = vld [vmem:[%s485_s18] sm:$0xff]  ;;  %v1985_v2 = vld [vmem:[%s485_s18 + $0x8] sm:$0xff]  ;;  %s472_s26 = sand.u32 1, %s1832_s30   ;;  %s1515_s27 = sshll.u32 %s1976_s25, 1 }
  0x1e   : > { %501 = vperm.xlu0 %1744, %v1982_v1   ;;  %v495_v4 = vld [vmem:[%s489_s15] sm:$0xff]  ;;  %s1511_s15 = sshll.u32 %s472_s26, 4  ;;  %s493_s18 = scalar_lea.vmem %s2331_s14, %s1515_s27 }
  0x1f   : > { %1619 = vmatprep.subr.mxu0 %v495_v4  ;;  %s474_s20 = scalar_lea.vmem [#allocation2], %s1511_s15  ;;  %s1586_s0 = sshll.u32 %s1946_s17, 8 }
  0x20   : > { %1620 = vmatpush3.msra.mxu0 %v495_v4  ;;  %s1406_s21 = sshll.u32 %s474_s20, 4  ;;  %s2273_s15 = scalar_lea.hbm %s2330_s13, %s1586_s0  ;;  %s2266_s21 = int_to_ptr.vmem [resolvable:$true] %s1406_s21 }
  0x21   : > { %1632 = vmatprep.subr.bf16.mxu0 %v1843_v3  ;;  %s2276_s17 = scalar_lea.sflag [#allocation3], %s472_s26  ;;  %s1778_s22 = scalar_lea.vmem %s2266_s21, 256 }
  0x22   : > { %504 = vperm.xlu0 %1744, %v1985_v2   ;;  %p1779_p11 = scmp.ne.s32.totalorder %s2266_s21, %s1778_s22 }
  0x24   : > { %p1780_p12 = pnand %p1779_p11, %p1963_p5 }
  0x26   : > { %p1781_p13 = pneg %p1780_p12 }
  0x9d   : > { %v502_v8 = vpop.permute.xlu0 %501 }
  0x9e   : > { %vm506_vm1 = vcmp.eq.s32.totalorder %v502_v8, %v1998_v7  ;;  %v1756_v8 = vld [vmem:[%s2324_s7 + $0x20] sm:$0xff]  }
  0x9f   : > { %v1516_v9 = vsel %vm506_vm1, 1.0, %v1843_v3  ;;  %vm1297_vm1 = vcmask 123904  }
  0xa0   : > { %1621 = vmatprep.mubr.msk.f32.mxu0 %vm512_vm0, %v1516_v9  ;;  %v1757_v9 = vld [vmem:[%s2324_s7 + $0x28] sm:$0xff]  }
  0xa1   : > { %v505_v10 = vpop.permute.xlu0 %504 }
  0xa2   : > { %vm507_vm2 = vcmp.eq.s32.totalorder %v505_v10, %v1998_v7  ;;  %v1758_v10 = vld [vmem:[%s2324_s7] sm:$0xff]  }
  0xa3   : > { %v1517_v11 = vsel %vm507_vm2, 1.0, %v1843_v3 }
  0xa4   : > { %1622 = vmatmul.mubr.msk.f32.vlgmr.msra.gmra.mrb[0].mxu0 %vm512_vm0, %v1517_v11  ;;  %v1759_v11 = vld [vmem:[%s2324_s7 + $0x30] sm:$0xff]  }
  0xa5   : > { %1633 = vmatpush3.bf16.msra.mxu0 %v1752_v13  ;;  %1636 = vmatprep.mubr.msk.bf16.mxu0 %vm1844_vm3, %v1843_v3  ;;  %v1761_v13 = vld [vmem:[%s2324_s7 + $0x38] sm:$0xff]  }
  0xa6   : > { %1634 = vmatprep.subr.bf16.mxu0 %v1843_v3 }
  0xa9   : > { %1635 = vmatpush3.bf16.msra.mxu0 %v1753_v14  ;;  %v1762_v14 = vld [vmem:[%s2324_s7 + $0x10] sm:$0xff]  }
  0xaa   : > { %1648 = vmatprep.subr.bf16.mxu0 %v1843_v3 }
 0x177   : > { %v2025_v17 = vpop.f32.mrb[0].mxu0 }
 0x178   : > { %v601_v18 = vrot.slane %v2025_v17, 7  ;;  %v614_v19 = vrot.slane %v2025_v17, 1  ;;  %v2031_v20 = vpop.f32.mrb[1].mxu0 }
 0x179   : > { %v600_v22 = vrot.slane %v2031_v20, 7  ;;  %v613_v23 = vrot.slane %v2031_v20, 1  ;;  %v629_v24 = vpack.c.bf16 %v2025_v17, %v2031_v20 }
 0x17b   : > { %v603_v25 = vsel %vm602_vm5, %v600_v22, %v601_v18  ;;  %v604_v26 = vsel %vm602_vm5, %v601_v18, %v600_v22  ;;  %v616_v27 = vsel %vm615_vm6, %v613_v23, %v614_v19  ;;  %v617_v28 = vsel %vm615_vm6, %v614_v19, %v613_v23  ;;  %1629 = vmatmul.mubr.msk.bf16.vlgmr.msra.gmra.mrb[0].mxu1 %vm647_vm7, %v629_v24  ;;  %v1764_v18 = vld [vmem:[%s2324_s7 + $0x18] sm:$0xff]  }
 0x17c   : > { %v609_v29 = vsel %vm598_vm4, %v604_v26, 0.0  ;;  %v623_v30 = vsel %vm612_vm8, %v617_v28, 0.0  ;;  %1641 = vmatpush3.bf16.msra.mxu1 %v1754_v21  ;;  %1644 = vmatprep.mubr.msk.bf16.mxu1 %vm1844_vm3, %v1843_v3 }
 0x17d   : > { %v624_v32 = vpack.c.bf16 %v603_v25, %v609_v29  ;;  %v748_v33 = vpack.c.bf16 %v623_v30, %v616_v27  ;;  %1642 = vmatprep.subr.bf16.mxu1 %v1843_v3 }
 0x17f   : > { %1637 = vmatmul.mubr.msk.bf16.vlgmr.msra.gmra.mrb[4].mxu0 %vm647_vm7, %v624_v32 }
 0x180   : > { %1643 = vmatpush3.bf16.msra.mxu1 %v1755_v31  ;;  %1656 = vmatprep.mubr.msk.bf16.mxu0 %vm1844_vm3, %v1843_v3 }
 0x181   : > { %1660 = vmatprep.subr.bf16.mxu1 %v1843_v3  ;;  %1649 = vmatpush3.bf16.msra.mxu0 %v1756_v8 }
 0x182   : > { %1650 = vmatprep.subr.bf16.mxu0 %v1843_v3 }
 0x183   : > { %1645 = vmatmul.mubr.msk.bf16.vlgmr.msra.gmra.mrb[4].mxu1 %vm647_vm7, %v748_v33 }
 0x184   : > { %1668 = vmatprep.mubr.msk.bf16.mxu1 %vm1844_vm3, %v1843_v3  ;;  %1661 = vmatpush3.bf16.msra.mxu1 %v1758_v10  ;;  %v1763_v10 = vld [vmem:[%s2324_s7 + $0x40] sm:$0xff]  }
 0x185   : > { %1651 = vmatpush3.bf16.msra.mxu0 %v1757_v9  ;;  %1662 = vmatprep.subr.bf16.mxu1 %v1843_v3 }
 0x186   : > { %1652 = vmatprep.subr.bf16.mxu0 %v1843_v3 }
 0x188   : > { %1663 = vmatpush3.bf16.msra.mxu1 %v1760_v12 }
 0x189   : > { %1653 = vmatpush3.bf16.msra.mxu0 %v1759_v11  ;;  %1664 = vmatprep.subr.bf16.mxu1 %v1843_v3 }
 0x18a   : > { %1654 = vmatprep.subr.bf16.mxu0 %v1843_v3 }
 0x18c   : > { %1665 = vmatpush3.bf16.msra.mxu1 %v1762_v14 }
 0x18d   : > { %1655 = vmatpush3.bf16.msra.mxu0 %v1761_v13  ;;  %1666 = vmatprep.subr.bf16.mxu1 %v1843_v3 }
 0x18e   : > { %1672 = vmatprep.subr.bf16.mxu0 %v1843_v3 }
 0x190   : > { %1667 = vmatpush3.bf16.msra.mxu1 %v1764_v18 }
 0x191   : > { %1684 = vmatprep.subr.bf16.mxu1 %v1843_v3 }
 0x24e   : > { %v685_v34 = vpop.f32.mrb[0].mxu1 }
 0x24f   : > { %v1630_v35 = vpop.f32.mrb[1].mxu1 }
 0x250   : > { %v688_v36 = vpop.f32.mrb[2].mxu1 }
 0x251   : > { %v1631_v37 = vpop.f32.mrb[3].mxu1 }
 0x252   : > { %v741_v38 = vpop.f32.mrb[4].mxu0 }
 0x253   : > { %v742_v39 = vadd.f32 %v741_v38, %v685_v34  ;;  %v1638_v40 = vpop.f32.mrb[5].mxu0 }
 0x254   : > { %v744_v41 = vpop.f32.mrb[6].mxu0 }
 0x255   : > { %v745_v42 = vadd.f32 %v744_v41, %v688_v36  ;;  %v1639_v43 = vpop.f32.mrb[7].mxu0 }
 0x256   : > { %v803_v44 = vpop.f32.mrb[4].mxu1 }
 0x257   : > { %v810_v46 = vadd.f32 %v803_v44, %v742_v39  ;;  %v1646_v47 = vpop.f32.mrb[5].mxu1 }
 0x258   : > { %v806_v48 = vpop.f32.mrb[6].mxu1 }
 0x259   : > { %v2072_v49 = vadd.f32 %v1537_v45, %v810_v46  ;;  %v811_v50 = vadd.f32 %v806_v48, %v745_v42  ;;  %v1647_v51 = vpop.f32.mrb[7].mxu1 }
 0x25b   : > { %v2074_v52 = vadd.f32 %v1537_v45, %v811_v50  ;;  %v824_v53 = vsel %vm823_vm10, %v2072_v49, 0.0  ;;  %v836_v54 = vsel %vm597_vm9, %v2072_v49, 0.0  ;;  %v821_v57 = vmul.f32 %v2072_v49, %v2072_v49 }
 0x25c   : > { %825 = vadd.xlane.f32.xlu1 %v824_v53  ;;  %v838_v55 = vsel %vm823_vm10, %v836_v54, 0.0 }
 0x25d   : > { %839 = vadd.xlane.f32.xlu0 %v838_v55  ;;  %v827_v56 = vsel %vm823_vm10, %v2074_v52, 0.0  ;;  %v830_v58 = vsel %vm823_vm10, %v821_v57, 0.0  ;;  %v837_v59 = vsel %vm597_vm9, %v2074_v52, 0.0  ;;  %v844_v61 = vsel %vm597_vm9, %v821_v57, 0.0 }
 0x25e   : > { %v841_v60 = vsel %vm823_vm10, %v837_v59, 0.0  ;;  %v846_v62 = vsel %vm823_vm10, %v844_v61, 0.0  ;;  %v822_v63 = vmul.f32 %v2074_v52, %v2074_v52  ;;  %v1539_v61 = vld [vmem:[%s2323_s6] ss:$0 sm:$0xff] }
 0x260   : > { %828 = vadd.xlane.f32.xlu1 %v827_v56  ;;  %v833_v4 = vsel %vm823_vm10, %v822_v63, 0.0  ;;  %v845_v5 = vsel %vm597_vm9, %v822_v63, 0.0 }
 0x261   : > { %v849_v6 = vsel %vm823_vm10, %v845_v5, 0.0 }
 0x264   : > { %831 = vadd.xlane.f32.xlu1 %v830_v58  ;;  %v1538_v58 = vld [vmem:[%s2322_s5] ss:$0 sm:$0xff] }
 0x268   : > { %842 = vadd.xlane.f32.xlu1 %v841_v60 }
 0x26c   : > { %847 = vadd.xlane.f32.xlu1 %v846_v62 }
 0x270   : > { %834 = vadd.xlane.f32.xlu1 %v833_v4 }
 0x274   : > { %850 = vadd.xlane.f32.xlu1 %v849_v6 }
 0x2e9   : > { %v826_v19 = vpop.xlane.xlu1 %825 }
 0x2ea   : > { %v840_v22 = vpop.xlane.xlu0 %839 }
 0x2eb   : > { %v854_v24 = vsub.f32 %v826_v19, %v840_v22  ;;  %v852_v26 = vmul.f32 0.03125, %v840_v22  ;;  %v1765_v19 = vld [vmem:[%s2324_s7 + $0x48] sm:$0xff]  }
 0x2ed   : > { %v829_v21 = vpop.xlane.xlu1 %828  ;;  %v856_v27 = vmul.f32 0.03125, %v854_v24  ;;  %v860_v31 = vmul.f32 %v852_v26, %v852_v26 }
 0x2ef   : > { %v868_v32 = vmul.f32 %v856_v27, %v856_v27  ;;  %v872_v53 = vsel %vm597_vm9, %v852_v26, %v856_v27  ;;  %v1767_v26 = vld [vmem:[%s2324_s7 + $0x58] sm:$0xff]  }
 0x2f0   : > { %v876_v55 = vsub.f32 %v2072_v49, %v872_v53 }
 0x2f1   : > { %v832_v23 = vpop.xlane.xlu1 %831 }
 0x2f5   : > { %v843_v25 = vpop.xlane.xlu1 %842 }
 0x2f6   : > { %v855_v33 = vsub.f32 %v829_v21, %v843_v25  ;;  %v853_v38 = vmul.f32 0.03125, %v843_v25 }
 0x2f8   : > { %v857_v39 = vmul.f32 0.03125, %v855_v33  ;;  %v861_v45 = vmul.f32 %v853_v38, %v853_v38 }
 0x2f9   : > { %v848_v28 = vpop.xlane.xlu1 %847 }
 0x2fa   : > { %v858_v29 = vmul.f32 0.03125, %v848_v28  ;;  %v864_v30 = vsub.f32 %v832_v23, %v848_v28  ;;  %v869_v46 = vmul.f32 %v857_v39, %v857_v39  ;;  %v873_v59 = vsel %vm597_vm9, %v853_v38, %v857_v39  ;;  %v1766_v23 = vld [vmem:[%s2324_s7 + $0x50] sm:$0xff]  }
 0x2fb   : > { %v877_v62 = vsub.f32 %v2074_v52, %v873_v59 }
 0x2fc   : > { %v866_v34 = vmul.f32 0.03125, %v864_v30  ;;  %v862_v36 = vsub.f32 %v858_v29, %v860_v31  ;;  %v1845_v30 = vmov 1  }
 0x2fd   : > { %v835_v35 = vpop.xlane.xlu1 %834  ;;  %1745 = vset.pattern.permute.xlu1 %v1845_v30  ;;  %1746 = vset.pattern.permute.xlu0 %v1845_v30 }
 0x2fe   : > { %v870_v37 = vsub.f32 %v866_v34, %v868_v32 }
 0x300   : > { %v874_v40 = vsel %vm597_vm9, %v862_v36, %v870_v37 }
 0x301   : > { %v878_v41 = vadd.f32 1e-05, %v874_v40  ;;  %v851_v42 = vpop.xlane.xlu1 %850 }
 0x302   : > { %v859_v43 = vmul.f32 0.03125, %v851_v42  ;;  %v865_v44 = vsub.f32 %v835_v35, %v851_v42 }
 0x303   : > { %1770 = vrsqrt.f32 %v878_v41 }
 0x304   : > { %v867_v47 = vmul.f32 0.03125, %v865_v44  ;;  %v863_v48 = vsub.f32 %v859_v43, %v861_v45 }
 0x306   : > { %v871_v50 = vsub.f32 %v867_v47, %v869_v46 }
 0x308   : > { %v875_v51 = vsel %vm597_vm9, %v863_v48, %v871_v50 }
 0x309   : > { %v879_v54 = vadd.f32 1e-05, %v875_v51 }
 0x30b   : > { %1772 = vrsqrt.f32 %v879_v54 }
 0x30d   : > { %v1771_v56 = vpop.eup %1770 }
 0x30e   : > { %v882_v57 = vmul.f32 %v1771_v56, %v876_v55 }
 0x310   : > { %v891_v60 = vmul.f32 %v1538_v58, %v882_v57 }
 0x312   : > { %v900_v5 = vadd.f32 %v1539_v61, %v891_v60 }
 0x314   : > { %v902_v8 = vmax.f32 %v900_v5, 0.0  ;;  %v1846_v5 = vmov 2  }
 0x315   : > { %v1773_v63 = vpop.eup %1772 }
 0x316   : > { %v883_v4 = vmul.f32 %v1773_v63, %v877_v62  ;;  %v904_v12 = vrot.slane %v902_v8, 7  ;;  %v910_v24 = vrot.slane %v902_v8, 1 }
 0x318   : > { %v892_v49 = vmul.f32 %v1538_v58, %v883_v4  ;;  %v1307_v4 = vadd.s32 16, %v1982_v1 }
 0x31a   : > { %v901_v6 = vadd.f32 %v1539_v61, %v892_v49  ;;  %v1308_v49 = vadd.s32 16, %v1985_v2 }
 0x31c   : > { %v903_v9 = vmax.f32 %v901_v6, 0.0  ;;  %v1244_v6 = vld [vmem:[%s2329_s12] sm:$0x3] }
 0x31e   : > { %v925_v11 = vpack.c.bf16 %v903_v9, %v902_v8  ;;  %v905_v13 = vrot.slane %v903_v9, 7  ;;  %v911_v22 = vrot.slane %v903_v9, 1 }
 0x320   : > { %1657 = vmatmul.mubr.msk.bf16.vlgmr.msra.gmra.mrb[8].mxu0 %vm823_vm10, %v925_v11  ;;  %v906_v14 = vsel %vm602_vm5, %v904_v12, %v905_v13  ;;  %v907_v52 = vsel %vm602_vm5, %v905_v13, %v904_v12  ;;  %v913_v25 = vsel %vm615_vm6, %v911_v22, %v910_v24  ;;  %v912_v27 = vsel %vm615_vm6, %v910_v24, %v911_v22 }
 0x321   : > { %1673 = vmatpush3.bf16.msra.mxu0 %v1763_v10  ;;  %v908_v18 = vsel %vm598_vm4, %v907_v52, 0.0  ;;  %1680 = vmatprep.mubr.msk.bf16.mxu0 %vm1844_vm3, %v1843_v3  ;;  %v915_v28 = vsel %vm612_vm8, %v913_v25, 0.0 }
 0x322   : > { %1674 = vmatprep.subr.bf16.mxu0 %v1843_v3  ;;  %v916_v21 = vpack.c.bf16 %v906_v14, %v908_v18  ;;  %v1071_v29 = vpack.c.bf16 %v915_v28, %v912_v27 }
 0x324   : > { %1669 = vmatmul.mubr.msk.bf16.vlgmr.msra.gmra.mrb[8].mxu1 %vm823_vm10, %v916_v21 }
 0x325   : > { %1675 = vmatpush3.bf16.msra.mxu0 %v1765_v19  ;;  %1686 = vmatprep.mubr.msk.bf16.mxu1 %vm1844_vm3, %v1843_v3 }
 0x326   : > { %1676 = vmatprep.subr.bf16.mxu0 %v1843_v3 }
 0x329   : > { %1677 = vmatpush3.bf16.msra.mxu0 %v1766_v23 }
 0x32a   : > { %1678 = vmatprep.subr.bf16.mxu0 %v1843_v3 }
 0x32d   : > { %1679 = vmatpush3.bf16.msra.mxu0 %v1767_v26 }
 0x330   : > { %1681 = vmatmul.mubr.msk.bf16.vlgmr.msra.gmra.mrb[12].mxu0 %vm823_vm10, %v1071_v29 }
 0x3f3   : > { %v996_v31 = vpop.f32.mrb[8].mxu0 }
 0x3f4   : > { %v1658_v32 = vpop.f32.mrb[9].mxu0 }
 0x3f5   : > { %v999_v33 = vpop.f32.mrb[10].mxu0 }
 0x3f6   : > { %v1659_v34 = vpop.f32.mrb[11].mxu0 }
 0x3f7   : > { %v1064_v35 = vpop.f32.mrb[8].mxu1 }
 0x3f8   : > { %v1065_v36 = vadd.f32 %v1064_v35, %v996_v31  ;;  %v1670_v37 = vpop.f32.mrb[9].mxu1 }
 0x3f9   : > { %v1067_v38 = vpop.f32.mrb[10].mxu1 }
 0x3fa   : > { %v1068_v15 = vadd.f32 %v1067_v38, %v999_v33  ;;  %v1671_v39 = vpop.f32.mrb[11].mxu1 }
 0x403   : > { %v1142_v40 = vpop.f32.mrb[12].mxu0 }
 0x404   : > { %v1149_v41 = vadd.f32 %v1142_v40, %v1065_v36  ;;  %v1682_v42 = vpop.f32.mrb[13].mxu0 }
 0x405   : > { %v1145_v43 = vpop.f32.mrb[14].mxu0 }
 0x406   : > { %v2185_v44 = vadd.f32 %v1571_v16, %v1149_v41  ;;  %v1150_v45 = vadd.f32 %v1145_v43, %v1068_v15  ;;  %v1683_v46 = vpop.f32.mrb[15].mxu0  ;;  %v1572_v43 = vld [vmem:[%s2326_s9] ss:$0 sm:$0xff] }
 0x408   : > { %v2187_v47 = vadd.f32 %v1571_v16, %v1150_v45  ;;  %v1162_v48 = vsel %vm823_vm10, %v2185_v44, 0.0  ;;  %v1174_v50 = vsel %vm597_vm9, %v2185_v44, 0.0  ;;  %v1160_v59 = vmul.f32 %v2185_v44, %v2185_v44 }
 0x409   : > { %1163 = vadd.xlane.f32.xlu1 %v1162_v48  ;;  %v1176_v55 = vsel %vm823_vm10, %v1174_v50, 0.0  ;;  %v1573_v50 = vld [vmem:[%s2327_s10] ss:$0 sm:$0xff] }
 0x40a   : > { %v1175_v51 = vsel %vm597_vm9, %v2187_v47, 0.0  ;;  %v1161_v54 = vmul.f32 %v2187_v47, %v2187_v47  ;;  %v1165_v57 = vsel %vm823_vm10, %v2187_v47, 0.0  ;;  %v1168_v61 = vsel %vm823_vm10, %v1160_v59, 0.0 }
 0x40b   : > { %v1179_v53 = vsel %vm823_vm10, %v1175_v51, 0.0  ;;  %v1182_v62 = vsel %vm597_vm9, %v1160_v59, 0.0 }
 0x40c   : > { %1180 = vadd.xlane.f32.xlu0 %v1179_v53  ;;  %v1171_v56 = vsel %vm823_vm10, %v1161_v54, 0.0  ;;  %v1183_v58 = vsel %vm597_vm9, %v1161_v54, 0.0  ;;  %v1184_v63 = vsel %vm823_vm10, %v1182_v62, 0.0  ;;  %v1242_v62 = vld [vmem:[%s2328_s11] sm:$0x1] }
 0x40d   : > { %1177 = vadd.xlane.f32.xlu1 %v1176_v55  ;;  %v1187_v60 = vsel %vm823_vm10, %v1183_v58, 0.0 }
 0x410   : > { %1172 = vadd.xlane.f32.xlu0 %v1171_v56 }
 0x411   : > { %1166 = vadd.xlane.f32.xlu1 %v1165_v57 }
 0x414   : > { %1188 = vadd.xlane.f32.xlu0 %v1187_v60 }
 0x415   : > { %1169 = vadd.xlane.f32.xlu1 %v1168_v61 }
 0x419   : > { %1185 = vadd.xlane.f32.xlu1 %v1184_v63  ;;  %v1768_v63 = vld [vmem:[%s2319_s2] sm:$0xff]  }
 0x42a   : > { %1300 = vperm.xlu1 %1745, %v1982_v1   ;;  %1303 = vperm.xlu0 %1746, %v1985_v2  }
 0x42e   : > { %1747 = vset.pattern.permute.xlu1 %v1846_v5  ;;  %1749 = vset.pattern.permute.xlu0 %v1846_v5 }
 0x42f   : > { %1310 = vperm.xlu1 %1747, %v1307_v4   ;;  %v1769_v4 = vld [vmem:[%s2319_s2 + $0x8] sm:$0xff]  }
 0x433   : > { %1313 = vperm.xlu1 %1747, %v1308_v49  }
 0x437   : > { %1748 = vset.pattern.permute.xlu1 %v1842_v0 }
 0x438   : > { %1247 = vperm.xlu1 %1748, %v1244_v6  }
 0x496   : > { %v1164_v8 = vpop.xlane.xlu1 %1163 }
 0x499   : > { %v1181_v9 = vpop.xlane.xlu0 %1180 }
 0x49a   : > { %v1178_v10 = vpop.xlane.xlu1 %1177  ;;  %v1191_v13 = vmul.f32 0.03125, %v1181_v9 }
 0x49b   : > { %v1192_v14 = vsub.f32 %v1164_v8, %v1178_v10  ;;  %v1190_v24 = vmul.f32 0.03125, %v1178_v10 }
 0x49c   : > { %v1199_v0 = vmul.f32 %v1191_v13, %v1191_v13 }
 0x49d   : > { %v1173_v11 = vpop.xlane.xlu0 %1172  ;;  %v1194_v25 = vmul.f32 0.03125, %v1192_v14  ;;  %v1198_v32 = vmul.f32 %v1190_v24, %v1190_v24 }
 0x49e   : > { %v1167_v12 = vpop.xlane.xlu1 %1166 }
 0x49f   : > { %v1193_v1 = vsub.f32 %v1167_v12, %v1181_v9  ;;  %v1206_v33 = vmul.f32 %v1194_v25, %v1194_v25  ;;  %v1210_v41 = vsel %vm597_vm9, %v1190_v24, %v1194_v25 }
 0x4a0   : > { %v1214_v45 = vsub.f32 %v2185_v44, %v1210_v41 }
 0x4a1   : > { %v1195_v52 = vmul.f32 0.03125, %v1193_v1  ;;  %v1189_v18 = vpop.xlane.xlu0 %1188 }
 0x4a2   : > { %v1197_v19 = vmul.f32 0.03125, %v1189_v18  ;;  %v1203_v2 = vsub.f32 %v1173_v11, %v1189_v18  ;;  %v1170_v21 = vpop.xlane.xlu1 %1169 }
 0x4a3   : > { %v1207_v22 = vmul.f32 %v1195_v52, %v1195_v52  ;;  %v1211_v39 = vsel %vm597_vm9, %v1191_v13, %v1195_v52 }
 0x4a4   : > { %v1205_v23 = vmul.f32 0.03125, %v1203_v2  ;;  %v1201_v26 = vsub.f32 %v1197_v19, %v1199_v0  ;;  %v1215_v40 = vsub.f32 %v2187_v47, %v1211_v39 }
 0x4a6   : > { %v1209_v27 = vsub.f32 %v1205_v23, %v1207_v22  ;;  %v1186_v28 = vpop.xlane.xlu1 %1185 }
 0x4a7   : > { %v1196_v29 = vmul.f32 0.03125, %v1186_v28  ;;  %v1202_v30 = vsub.f32 %v1170_v21, %v1186_v28 }
 0x4a8   : > { %v1213_v31 = vsel %vm597_vm9, %v1201_v26, %v1209_v27 }
 0x4a9   : > { %v1217_v34 = vadd.f32 1e-05, %v1213_v31  ;;  %v1204_v35 = vmul.f32 0.03125, %v1202_v30  ;;  %v1200_v36 = vsub.f32 %v1196_v29, %v1198_v32  ;;  %v1304_v61 = vpop.permute.xlu0 %1303 }
 0x4aa   : > { %v1301_v51 = vpop.permute.xlu1 %1300  ;;  %vm1306_vm13 = vcmp.eq.s32.totalorder %v1304_v61, %v1998_v7 }
 0x4ab   : > { %1774 = vrsqrt.f32 %v1217_v34  ;;  %v1208_v37 = vsub.f32 %v1204_v35, %v1206_v33  ;;  %vm1305_vm11 = vcmp.eq.s32.totalorder %v1301_v51, %v1998_v7 }
 0x4ad   : > { %v1212_v38 = vsel %vm597_vm9, %v1200_v36, %v1208_v37 }
 0x4ae   : > { %v1216_v15 = vadd.f32 1e-05, %v1212_v38  ;;  %v1311_v56 = vpop.permute.xlu1 %1310 }
 0x4af   : > { %vm1315_vm12 = vcmp.eq.s32.totalorder %v1311_v56, %v1998_v7 }
 0x4b0   : > { %1776 = vrsqrt.f32 %v1216_v15  ;;  %vm1317_vm15 = vmor %vm1305_vm11, %vm1315_vm12 }
 0x4b2   : > { %v1314_v44 = vpop.permute.xlu1 %1313 }
 0x4b3   : > { %vm1316_vm14 = vcmp.eq.s32.totalorder %v1314_v44, %v1998_v7  ;;  %v1575_v7 = vsel %vm1317_vm15, 1.0, %v1843_v3 }
 0x4b4   : > { %vm1318_vm0 = vmor %vm1306_vm13, %vm1316_vm14 }
 0x4b5   : > { %v1775_v16 = vpop.eup %1774  ;;  %v1576_v5 = vsel %vm1318_vm0, 1.0, %v1843_v3 }
 0x4b6   : > { %v1221_v42 = vmul.f32 %v1775_v16, %v1215_v40  ;;  %v1323_v49 = vpack.c.bf16 %v1576_v5, %v1575_v7 }
 0x4b7   : > { %v1248_v6 = vpop.permute.xlu1 %1247 }
 0x4b8   : > { %v1230_v46 = vmul.f32 %v1572_v43, %v1221_v42 }
 0x4ba   : > { %v1777_v48 = vpop.eup %1776  ;;  %v1239_v54 = vadd.f32 %v1573_v50, %v1230_v46 }
 0x4bb   : > { %v1220_v53 = vmul.f32 %v1777_v48, %v1214_v45 }
 0x4bc   : > { %v1241_v58 = vmax.f32 %v1239_v54, 0.0 }
 0x4bd   : > { %v1229_v47 = vmul.f32 %v1572_v43, %v1220_v53 }
 0x4bf   : > { %v1238_v55 = vadd.f32 %v1573_v50, %v1229_v47 }
 0x4c1   : > { %v1240_v57 = vmax.f32 %v1238_v55, 0.0 }
 0x4c3   : > { %v1243_v59 = vpack.c.bf16 %v1241_v58, %v1240_v57 }
 0x4c5   : > { %v1254_v60 = vsel %vm823_vm10, %v1243_v59, 0 }
 0x4c6   : > { %1685 = vmatpush3.bf16.xpose.msra.mxu1 %v1254_v60 }
 0x4c7   : > { %1690 = vmatprep.subr.bf16.mxu1 %v1843_v3 }
 0x4cd   : > { %1687 = vmatmul.mubr.msk.bf16.vlgmr.msra.gmra.mrb[12].mxu1 %vm823_vm10, %v1242_v62 }
 0x4ce   : > { %1691 = vmatpush3.bf16.msra.mxu1 %v1768_v63  ;;  %1694 = vmatprep.mubr.msk.bf16.mxu1 %vm1844_vm3, %v1843_v3 }
 0x4cf   : > { %1692 = vmatprep.subr.bf16.mxu1 %v1843_v3 }
 0x4d2   : > { %1693 = vmatpush3.bf16.msra.mxu1 %v1769_v4 }
 0x4d5   : > { %1695 = vmatmul.mubr.msk.bf16.vlgmr.msra.gmra.mrb[16].mxu1 %vm647_vm7, %v1323_v49 }
 0x5a0   : > { %v1290_v8 = vpop.f32.mrb[12].mxu1 }
 0x5a1   : > { %v1688_v9 = vpop.f32.mrb[13].mxu1  ;;  %v1291_v10 = vadd.f32 %v1290_v8, %v1248_v6 }
 0x5a2   : > { %v1293_v11 = vpop.f32.mrb[14].mxu1 }
 0x5a3   : > { %v1296_v12 = vmax.f32 %v1291_v10, 0.0  ;;  %v1689_v3 = vpop.f32.mrb[15].mxu1 }
 0x5a5   : > { %1298 = vst.msk [vmem:[%s493_s18] sm:$0x3] %vm1297_vm1, %v1296_v12  ;;  %s1782_s18 = sshll.u32 %s1847_s28, 4  ;;  %s1783_s18 = int_to_ptr.vmem [resolvable:$false] %s1782_s18 }
 0x5a6   : > { %s1784_s1 = scalar_lea.vmem %s1783_s18, 512  ;;  %p1785_p0 = scmp.lt.s32.totalorder %s2266_s21, %s1783_s18 }
 0x5a7   : > { %p1786_p1 = scmp.lt.s32.totalorder %s1784_s1, %s1778_s22 }
 0x5a8   : > { %v1377_v1 = vpop.f32.mrb[16].mxu1 }
 0x5a9   : > { %v1384_v13 = vadd.f32 %v1377_v1, %v2031_v20  ;;  %v1696_v14 = vpop.f32.mrb[17].mxu1  ;;  %p1787_p2 = por %p1786_p1, %p1785_p0 }
 0x5aa   : > { %v1380_v52 = vpop.f32.mrb[18].mxu1 }
 0x5ab   : > { %1386 = vst.msk [vmem:[%s474_s20] sm:$0xff] %vm647_vm7, %v1384_v13  ;;  %v1385_v18 = vadd.f32 %v2025_v17, %v1380_v52  ;;  %v1697_v19 = vpop.f32.mrb[19].mxu1  ;;  %p1788_p3 = pnand %p1787_p2, %p1781_p13 }
 0x5ad   : > { %1387 = vst.msk [vmem:[%s474_s20 + $0x8] sm:$0xff] %vm647_vm7, %v1385_v18 }
 0x5ae   : > { %1791 = shalt.err (!%p1788_p3)
}
 0x5af   : > { %s1792_s0 = scalar_lea.hbm %s2273_s15, 256  ;;  %s1796_s25 = scalar_lea.hbm %s2330_s13, 512 }
 0x5b0   : > { %p1793_p4 = scmp.ne.s32.totalorder %s2273_s15, %s1792_s0  ;;  %p1797_p9 = scmp.lt.u32.totalorder %s2273_s15, %s2330_s13 }
 0x5b1   : > { %p1798_p10 = scmp.lt.u32.totalorder %s1796_s25, %s1792_s0  ;;  %p1800_p12 = scmp.lt.u32.totalorder %s1792_s0, %s2273_s15 }
 0x5b2   : > { %p1794_p7 = pnand %p1793_p4, %p1963_p5 }
 0x5b3   : > { %p1799_p11 = por %p1798_p10, %p1797_p9 }
 0x5b4   : > { %p1795_p8 = pneg %p1794_p7 }
 0x5b5   : > { %p1801_p13 = por %p1800_p12, %p1799_p11 }
 0x5b7   : > { %p1802_p0 = pnand %p1801_p13, %p1795_p8 }
 0x5b9   : > { %1805 = shalt.err (!%p1802_p0)
}
 0x5ba   : > { %s1848_s1 = smov 128   ;;  %s1849_s22 = smov 8  }
 0x5bb   : > { %1698 = dma.vmem_to_hbm [thread:$0]  (%p1963_p5), %s2266_s21, 256, %s2273_s15, %s2276_s17, %s1848_s1, %s1848_s1, %s1849_s22  }
 0x5bc PF: > { %p1704_p1 = scmp.ge.s32.totalorder %s1840_s16, 2  ;;  %s1424_s18 = sand.u32 1, %s1828_s29  }
 0x5bd   : > { %s1425_s0 = scalar_lea.sflag [#allocation3], %s1424_s18 }
 0x5be   : > { %p1701_p2 = pnand %p1704_p1, %p1967_p6 }
 0x5c0   : > { %1823 = dma.done.wait (!%p1701_p2), %s1425_s0, 256  }
 0x5c1   : > { %1825 = vsyncadd (!%p1701_p2), %s1425_s0, 4294967040  ;;  %s2341_s26 = sld [smem:[#allocation5_spill]]  ;;  %s2342_s15 = sld [smem:[#allocation6_spill]] }
 0x5c2   : > { %p25_p3 = scmp.ge.s32.totalorder %s1950_s19, 4   ;;  %s2343_s29 = smov %s1832_s30 }
 0x5c3   : > { %s2345_s16 = smov %s1950_s19 }
 0x5c4   :  { %27 = sbr.rel (!%p25_p3) target bundleno = 6 (0x6), region = 126 }
 0x5c7   : > { %s2344_s30 = smov %s2341_s26 }
 0x5cb   :  { %1437 = vsyncpa [#allocation3], 1 }
 0x5cc   :  { %1439 = vsyncpa [#allocation3 + $0x1], 1 }

</bundles_post_ra>
